<compile_context>
chip_gen: v7x
topology: tpu7x:2x2x1
jax: 0.10.0
libtpu: 0.0.40
codegen_flags: <defaults>
</compile_context>

<pallas_src>
import functools
import math

import jax
import jax.numpy as jnp
from jax.experimental import pallas as pl
from jax.experimental.pallas import tpu as pltpu


# ----------------------------------------------------------------------------
# Pallas kernel: hoisted input projection (to VMEM scratch) + unrolled LSTM
# recurrence + folded, lane-dense dense head.
# ----------------------------------------------------------------------------
def rnnet_kernel(x_ref, wih_ref, whh_ref, b_ref, whead_ref, bhead_ref,
                 out_ref, xg_ref, *, approx_sigmoid=True):
    H = whh_ref.shape[0]                 # hidden size (128 -> 128-lane gate slices)
    Bp = out_ref.shape[0]                # sublane-padded batch
    T = x_ref.shape[0] // Bp             # static sequence length
    rec_dtype = whh_ref.dtype            # f32 or bf16 MXU operands (f32 accumulation)

    def sigmoid(v):
        if approx_sigmoid:
            # exp on the EUP, approximate reciprocal on the EUP -> no VPU divide.
            return pl.reciprocal(1.0 + jnp.exp(-v), approx=True)
        return jax.nn.sigmoid(v)

    # Hoisted input projection: one (T*Bp, D) x (D, 4H) MXU matmul instead of
    # T tiny matmuls on the serial critical path.  Result lives in VMEM
    # scratch, not as a 32-vreg live value across the unrolled loop.
    xg_ref[...] = (
        jnp.dot(x_ref[...], wih_ref[...], preferred_element_type=jnp.float32)
        + b_ref[...]
    )  # (T*Bp, 4H) float32, PyTorch gate order i, f, g, o

    h = jnp.zeros((Bp, H), jnp.float32)
    c = jnp.zeros((Bp, H), jnp.float32)

    # Static unrolled recurrence (T is small & static): all slices are static
    # and (8, 128)-aligned, LLO scheduler sees across iterations.
    for t in range(T):
        gates = xg_ref[t * Bp:(t + 1) * Bp, :] + jnp.dot(
            h.astype(rec_dtype), whh_ref[...],      # read the ref per step: no
            preferred_element_type=jnp.float32,     # 64-vreg live weight value
        )  # (Bp, 4H) f32
        # H == 128 -> each gate slice is a full 128-lane aligned tile.
        i_g = sigmoid(gates[:, 0 * H:1 * H])
        f_g = sigmoid(gates[:, 1 * H:2 * H])
        g_g = jnp.tanh(gates[:, 2 * H:3 * H])
        o_g = sigmoid(gates[:, 3 * H:4 * H])
        c = f_g * c + i_g * g_g
        h = o_g * jnp.tanh(c)
        # nn.Dropout(hidden_state) is identity in eval/inference mode.

    # Folded dense head, padded to 128 output lanes -> lane-dense (unmasked) store.
    out_ref[...] = (
        jnp.dot(h, whead_ref[...], preferred_element_type=jnp.float32)
        + bhead_ref[...]
    )


# ----------------------------------------------------------------------------
# One-time parameter prep (hoisted out of the per-call wrapper):
#  * fold the dense head:  (h@w1+b1)@w2+b2 == h@(w1@w2) + (b1@w2+b2)
#  * pad the folded head to 128 output lanes (lane-dense output store)
#  * cast LSTM matmul operands to the chosen MXU dtype (bf16 is fine on every
#    chip incl. v5e — the MXU is natively bf16; gate math stays f32).
# ----------------------------------------------------------------------------
def prepare_params(params, matmul_dtype=jnp.float32):
    LANES = 128
    w_eff = params["w1"] @ params["w2"]                      # (H, F2) f32
    b_eff = params["b1"] @ params["w2"] + params["b2"]       # (1, F2) f32
    F2 = w_eff.shape[1]
    n_pad = ((F2 + LANES - 1) // LANES) * LANES
    return {
        "w_ih": params["w_ih"].astype(matmul_dtype),         # (D, 4H)
        "w_hh": params["w_hh"].astype(matmul_dtype),         # (H, 4H)
        "b": params["b"],                                     # (1, 4H) f32
        "w_head": jnp.pad(w_eff, ((0, 0), (0, n_pad - F2))),  # (H, n_pad) f32
        "b_head": jnp.pad(b_eff, ((0, 0), (0, n_pad - F2))),  # (1, n_pad) f32
    }


# ----------------------------------------------------------------------------
# Jitted wrapper: single transpose+reshape+pad of x (fused by XLA) + kernel call.
# ----------------------------------------------------------------------------
@functools.partial(jax.jit, static_argnames=("out_features", "approx_sigmoid"))
def rnnet_forward(x, prepped, out_features, approx_sigmoid=True):
    """x: (B, C, T, bins) float32; returns (B, out_features) float32."""
    B, C, T, bins = x.shape
    D = C * bins
    H = prepped["w_hh"].shape[0]
    matmul_dtype = prepped["w_ih"].dtype
    n_pad = prepped["w_head"].shape[1]

    # permute(0,2,1,3).view(B,T,C*bins) then time-major, in ONE transpose:
    # row (t, b) = concat_c x[b, c, t, :]  ==  transpose to (T, B, C, bins).
    x_tbd = jnp.transpose(x, (2, 0, 1, 3)).reshape(T, B, D)

    # Pad batch to a sublane multiple so per-step tiles are (8, 128)-dense.
    Bp = ((B + 7) // 8) * 8
    if Bp != B:
        x_tbd = jnp.pad(x_tbd, ((0, 0), (0, Bp - B), (0, 0)))
    x_flat = x_tbd.reshape(T * Bp, D).astype(matmul_dtype)   # (T*Bp, D)

    inputs = (x_flat, prepped["w_ih"], prepped["w_hh"], prepped["b"],
              prepped["w_head"], prepped["b_head"])

    # Advisory cost estimate so XLA can overlap this few-µs custom call.
    flops = 2 * T * Bp * D * 4 * H + 2 * T * Bp * H * 4 * H + 2 * Bp * H * n_pad
    transcendentals = 6 * T * Bp * H
    bytes_accessed = sum(a.size * a.dtype.itemsize for a in inputs) \
        + Bp * n_pad * 4

    vmem = pl.BlockSpec(memory_space=pltpu.MemorySpace.VMEM)
    out_pad = pl.pallas_call(
        functools.partial(rnnet_kernel, approx_sigmoid=approx_sigmoid),
        out_shape=jax.ShapeDtypeStruct((Bp, n_pad), jnp.float32),
        in_specs=[vmem] * 6,
        out_specs=vmem,
        scratch_shapes=[pltpu.VMEM((T * Bp, 4 * H), jnp.float32)],
        cost_estimate=pl.CostEstimate(
            flops=flops,
            transcendentals=transcendentals,
            bytes_accessed=bytes_accessed),
        compiler_params=pltpu.CompilerParams(
            vmem_limit_bytes=32 * 1024 * 1024),
    )(*inputs)

    return out_pad[:B, :out_features]


# ----------------------------------------------------------------------------
# Pure-JAX f32 reference (unfused, per-timestep — mirrors the PyTorch forward).
# ----------------------------------------------------------------------------
def rnnet_reference(x, params):
    B, C, T, bins = x.shape
    D = C * bins
    x_seq = jnp.transpose(x, (0, 2, 1, 3)).reshape(B, T, D)
    H = params["w_hh"].shape[0]
    h = jnp.zeros((B, H), jnp.float32)
    c = jnp.zeros((B, H), jnp.float32)
    for t in range(T):
        gates = x_seq[:, t, :] @ params["w_ih"] + h @ params["w_hh"] + params["b"]
        i_g = jax.nn.sigmoid(gates[:, 0 * H:1 * H])
        f_g = jax.nn.sigmoid(gates[:, 1 * H:2 * H])
        g_g = jnp.tanh(gates[:, 2 * H:3 * H])
        o_g = jax.nn.sigmoid(gates[:, 3 * H:4 * H])
        c = f_g * c + i_g * g_g
        h = o_g * jnp.tanh(c)
    d1 = h @ params["w1"] + params["b1"]
    return d1 @ params["w2"] + params["b2"]


# ----------------------------------------------------------------------------
# Deterministic parameter init (shapes follow the module's __init__; weights
# stored transposed, i.e. (in_features, out_features)).
# ----------------------------------------------------------------------------
def init_params(key, in_channels, num_bins, hidden_size, dense_features):
    D = in_channels * num_bins
    H = hidden_size
    sqrt_k = math.sqrt(1.0 / H)
    keys = jax.random.split(key, 8)

    w_ih = jax.random.uniform(keys[0], (D, 4 * H), jnp.float32, -sqrt_k, sqrt_k)
    w_hh = jax.random.uniform(keys[1], (H, 4 * H), jnp.float32, -sqrt_k, sqrt_k)
    b_ih = jax.random.uniform(keys[2], (1, 4 * H), jnp.float32, -sqrt_k, sqrt_k)
    b_hh = jax.random.uniform(keys[3], (1, 4 * H), jnp.float32, -sqrt_k, sqrt_k)

    f1, f2 = dense_features
    bound1 = math.sqrt(6.0 / H)      # kaiming-uniform bound, fan_in = H
    bound2 = math.sqrt(6.0 / f1)
    w1 = jax.random.uniform(keys[4], (H, f1), jnp.float32, -bound1, bound1)
    w2 = jax.random.uniform(keys[5], (f1, f2), jnp.float32, -bound2, bound2)

    return {
        "w_ih": w_ih,
        "w_hh": w_hh,
        "b": b_ih + b_hh,            # combined LSTM bias
        "w1": w1,
        "b1": jnp.zeros((1, f1), jnp.float32),
        "w2": w2,
        "b2": jnp.zeros((1, f2), jnp.float32),
    }


if __name__ == "__main__":
    # Small shapes consistent with the module: x is (B, in_channels, T, num_bins).
    # H = 128 (module default) keeps every gate slice a full 128-lane tile.
    B, C, T, BINS = 2, 4, 8, 32
    H = 128
    dense_features = [64, 1]
    F2 = dense_features[-1]

    key = jax.random.PRNGKey(0)
    k_x, k_p = jax.random.split(key)
    x = jax.random.normal(k_x, (B, C, BINS, T), jnp.float32)  # placeholder
    x = jax.random.normal(k_x, (B, C, T, BINS), jnp.float32)
    params = init_params(k_p, C, BINS, H, dense_features)

    ref = rnnet_reference(x, params)

    # Exact-semantics path: f32 MXU operands, exact sigmoid -> tight tolerance.
    prepped_f32 = prepare_params(params, matmul_dtype=jnp.float32)
    out = jax.block_until_ready(
        rnnet_forward(x, prepped_f32, out_features=F2, approx_sigmoid=False))
    assert out.shape == (B, F2)
    assert jnp.allclose(out, ref, atol=1e-4, rtol=1e-4), (out, ref)

    # Fast path (recommended on every chip, v5e included): bf16 MXU operands
    # (f32 accumulation + f32 gate math) + approximate EUP reciprocal in the
    # sigmoids -> only matmul-input rounding / recip approximation differ.
    prepped_bf16 = prepare_params(params, matmul_dtype=jnp.bfloat16)
    out_fast = jax.block_until_ready(
        rnnet_forward(x, prepped_bf16, out_features=F2, approx_sigmoid=True))
    assert out_fast.shape == (B, F2)
    assert jnp.allclose(out_fast, ref, atol=1e-1, rtol=1e-1), (out_fast, ref)

    print("KERNEL_OK")
</pallas_src>

<mosaic_0001>
module attributes {stable_mosaic.version = 11 : i64} {
  func.func @rnnet_kernel(%arg0: memref<64x128xf32, #tpu.memory_space<vmem>>, %arg1: memref<128x512xf32, #tpu.memory_space<vmem>>, %arg2: memref<128x512xf32, #tpu.memory_space<vmem>>, %arg3: memref<1x512xf32, #tpu.memory_space<vmem>>, %arg4: memref<128x128xf32, #tpu.memory_space<vmem>>, %arg5: memref<1x128xf32, #tpu.memory_space<vmem>>, %arg6: memref<8x128xf32, #tpu.memory_space<vmem>>, %arg7: memref<64x512xf32, #tpu.memory_space<vmem>>) attributes {dimension_semantics = [], scalar_prefetch = 0 : i64, scratch_operands = 1 : i64, tpu.core_type = #tpu.core_type<tc>} {
    %c0 = arith.constant 0 : index
    %c0_0 = arith.constant 0 : index
    %0 = vector.load %arg0[%c0, %c0_0] : memref<64x128xf32, #tpu.memory_space<vmem>>, vector<64x128xf32>
    %c0_1 = arith.constant 0 : index
    %c0_2 = arith.constant 0 : index
    %1 = vector.load %arg1[%c0_1, %c0_2] : memref<128x512xf32, #tpu.memory_space<vmem>>, vector<128x512xf32>
    %cst = arith.constant dense<0.000000e+00> : vector<64x512xf32>
    %2 = tpu.matmul %0, %1, %cst {dimension_numbers = #tpu.dot_dimension_numbers<[1], [0], [0], [1], [0, 0, 1, 1], [], []>} : vector<64x128xf32>, vector<128x512xf32>, vector<64x512xf32> -> vector<64x512xf32>
    %c0_3 = arith.constant 0 : index
    %c0_4 = arith.constant 0 : index
    %3 = vector.load %arg3[%c0_3, %c0_4] : memref<1x512xf32, #tpu.memory_space<vmem>>, vector<1x512xf32>
    %4 = vector.broadcast %3 : vector<1x512xf32> to vector<64x512xf32>
    %5 = arith.addf %2, %4 : vector<64x512xf32>
    %c0_5 = arith.constant 0 : index
    %c0_6 = arith.constant 0 : index
    %6 = vector.load %arg7[%c0_5, %c0_6] : memref<64x512xf32, #tpu.memory_space<vmem>>, vector<64x512xf32>
    tpu.vector_store %arg7[%c0_5, %c0_6], %5 {strides = array<i32>} : memref<64x512xf32, #tpu.memory_space<vmem>>, vector<64x512xf32>,
    %cst_7 = arith.constant 0.000000e+00 : f32
    %7 = vector.broadcast %cst_7 : f32 to vector<8x128xf32>
    %cst_8 = arith.constant 0.000000e+00 : f32
    %8 = vector.broadcast %cst_8 : f32 to vector<8x128xf32>
    %c0_9 = arith.constant 0 : index
    %c0_10 = arith.constant 0 : index
    %9 = vector.load %arg7[%c0_9, %c0_10] : memref<64x512xf32, #tpu.memory_space<vmem>>, vector<8x512xf32>
    %c0_11 = arith.constant 0 : index
    %c0_12 = arith.constant 0 : index
    %10 = vector.load %arg2[%c0_11, %c0_12] : memref<128x512xf32, #tpu.memory_space<vmem>>, vector<128x512xf32>
    %cst_13 = arith.constant dense<0.000000e+00> : vector<8x512xf32>
    %11 = tpu.matmul %7, %10, %cst_13 {dimension_numbers = #tpu.dot_dimension_numbers<[1], [0], [0], [1], [0, 0, 1, 1], [], []>} : vector<8x128xf32>, vector<128x512xf32>, vector<8x512xf32> -> vector<8x512xf32>
    %12 = arith.addf %9, %11 : vector<8x512xf32>
    %13 = vector.extract_strided_slice %12 {offsets = [0, 0], sizes = [8, 128], strides = [1, 1]} : vector<8x512xf32> to vector<8x128xf32>
    %14 = arith.negf %13 : vector<8x128xf32>
    %15 = math.exp %14 : vector<8x128xf32>
    %cst_14 = arith.constant 1.000000e+00 : f32
    %16 = vector.broadcast %cst_14 : f32 to vector<8x128xf32>
    %17 = arith.addf %16, %15 : vector<8x128xf32>
    %18 = arith.divf %16, %17 : vector<8x128xf32>
    %19 = vector.extract_strided_slice %12 {offsets = [0, 128], sizes = [8, 128], strides = [1, 1]} : vector<8x512xf32> to vector<8x128xf32>
    %20 = arith.negf %19 : vector<8x128xf32>
    %21 = math.exp %20 : vector<8x128xf32>
    %cst_15 = arith.constant 1.000000e+00 : f32
    %22 = vector.broadcast %cst_15 : f32 to vector<8x128xf32>
    %23 = arith.addf %22, %21 : vector<8x128xf32>
    %24 = arith.divf %22, %23 : vector<8x128xf32>
    %25 = vector.extract_strided_slice %12 {offsets = [0, 256], sizes = [8, 128], strides = [1, 1]} : vector<8x512xf32> to vector<8x128xf32>
    %26 = math.tanh %25 : vector<8x128xf32>
    %27 = vector.extract_strided_slice %12 {offsets = [0, 384], sizes = [8, 128], strides = [1, 1]} : vector<8x512xf32> to vector<8x128xf32>
    %28 = arith.negf %27 : vector<8x128xf32>
    %29 = math.exp %28 : vector<8x128xf32>
    %cst_16 = arith.constant 1.000000e+00 : f32
    %30 = vector.broadcast %cst_16 : f32 to vector<8x128xf32>
    %31 = arith.addf %30, %29 : vector<8x128xf32>
    %32 = arith.divf %30, %31 : vector<8x128xf32>
    %33 = arith.mulf %24, %8 : vector<8x128xf32>
    %34 = arith.mulf %18, %26 : vector<8x128xf32>
    %35 = arith.addf %33, %34 : vector<8x128xf32>
    %36 = math.tanh %35 : vector<8x128xf32>
    %37 = arith.mulf %32, %36 : vector<8x128xf32>
    %c8 = arith.constant 8 : index
    %c0_17 = arith.constant 0 : index
    %38 = vector.load %arg7[%c8, %c0_17] : memref<64x512xf32, #tpu.memory_space<vmem>>, vector<8x512xf32>
    %c0_18 = arith.constant 0 : index
    %c0_19 = arith.constant 0 : index
    %39 = vector.load %arg2[%c0_18, %c0_19] : memref<128x512xf32, #tpu.memory_space<vmem>>, vector<128x512xf32>
    %cst_20 = arith.constant dense<0.000000e+00> : vector<8x512xf32>
    %40 = tpu.matmul %37, %39, %cst_20 {dimension_numbers = #tpu.dot_dimension_numbers<[1], [0], [0], [1], [0, 0, 1, 1], [], []>} : vector<8x128xf32>, vector<128x512xf32>, vector<8x512xf32> -> vector<8x512xf32>
    %41 = arith.addf %38, %40 : vector<8x512xf32>
    %42 = vector.extract_strided_slice %41 {offsets = [0, 0], sizes = [8, 128], strides = [1, 1]} : vector<8x512xf32> to vector<8x128xf32>
    %43 = arith.negf %42 : vector<8x128xf32>
    %44 = math.exp %43 : vector<8x128xf32>
    %cst_21 = arith.constant 1.000000e+00 : f32
    %45 = vector.broadcast %cst_21 : f32 to vector<8x128xf32>
    %46 = arith.addf %45, %44 : vector<8x128xf32>
    %47 = arith.divf %45, %46 : vector<8x128xf32>
    %48 = vector.extract_strided_slice %41 {offsets = [0, 128], sizes = [8, 128], strides = [1, 1]} : vector<8x512xf32> to vector<8x128xf32>
    %49 = arith.negf %48 : vector<8x128xf32>
    %50 = math.exp %49 : vector<8x128xf32>
    %cst_22 = arith.constant 1.000000e+00 : f32
    %51 = vector.broadcast %cst_22 : f32 to vector<8x128xf32>
    %52 = arith.addf %51, %50 : vector<8x128xf32>
    %53 = arith.divf %51, %52 : vector<8x128xf32>
    %54 = vector.extract_strided_slice %41 {offsets = [0, 256], sizes = [8, 128], strides = [1, 1]} : vector<8x512xf32> to vector<8x128xf32>
    %55 = math.tanh %54 : vector<8x128xf32>
    %56 = vector.extract_strided_slice %41 {offsets = [0, 384], sizes = [8, 128], strides = [1, 1]} : vector<8x512xf32> to vector<8x128xf32>
    %57 = arith.negf %56 : vector<8x128xf32>
    %58 = math.exp %57 : vector<8x128xf32>
    %cst_23 = arith.constant 1.000000e+00 : f32
    %59 = vector.broadcast %cst_23 : f32 to vector<8x128xf32>
    %60 = arith.addf %59, %58 : vector<8x128xf32>
    %61 = arith.divf %59, %60 : vector<8x128xf32>
    %62 = arith.mulf %53, %35 : vector<8x128xf32>
    %63 = arith.mulf %47, %55 : vector<8x128xf32>
    %64 = arith.addf %62, %63 : vector<8x128xf32>
    %65 = math.tanh %64 : vector<8x128xf32>
    %66 = arith.mulf %61, %65 : vector<8x128xf32>
    %c16 = arith.constant 16 : index
    %c0_24 = arith.constant 0 : index
    %67 = vector.load %arg7[%c16, %c0_24] : memref<64x512xf32, #tpu.memory_space<vmem>>, vector<8x512xf32>
    %c0_25 = arith.constant 0 : index
    %c0_26 = arith.constant 0 : index
    %68 = vector.load %arg2[%c0_25, %c0_26] : memref<128x512xf32, #tpu.memory_space<vmem>>, vector<128x512xf32>
    %cst_27 = arith.constant dense<0.000000e+00> : vector<8x512xf32>
    %69 = tpu.matmul %66, %68, %cst_27 {dimension_numbers = #tpu.dot_dimension_numbers<[1], [0], [0], [1], [0, 0, 1, 1], [], []>} : vector<8x128xf32>, vector<128x512xf32>, vector<8x512xf32> -> vector<8x512xf32>
    %70 = arith.addf %67, %69 : vector<8x512xf32>
    %71 = vector.extract_strided_slice %70 {offsets = [0, 0], sizes = [8, 128], strides = [1, 1]} : vector<8x512xf32> to vector<8x128xf32>
    %72 = arith.negf %71 : vector<8x128xf32>
    %73 = math.exp %72 : vector<8x128xf32>
    %cst_28 = arith.constant 1.000000e+00 : f32
    %74 = vector.broadcast %cst_28 : f32 to vector<8x128xf32>
    %75 = arith.addf %74, %73 : vector<8x128xf32>
    %76 = arith.divf %74, %75 : vector<8x128xf32>
    %77 = vector.extract_strided_slice %70 {offsets = [0, 128], sizes = [8, 128], strides = [1, 1]} : vector<8x512xf32> to vector<8x128xf32>
    %78 = arith.negf %77 : vector<8x128xf32>
    %79 = math.exp %78 : vector<8x128xf32>
    %cst_29 = arith.constant 1.000000e+00 : f32
    %80 = vector.broadcast %cst_29 : f32 to vector<8x128xf32>
    %81 = arith.addf %80, %79 : vector<8x128xf32>
    %82 = arith.divf %80, %81 : vector<8x128xf32>
    %83 = vector.extract_strided_slice %70 {offsets = [0, 256], sizes = [8, 128], strides = [1, 1]} : vector<8x512xf32> to vector<8x128xf32>
    %84 = math.tanh %83 : vector<8x128xf32>
    %85 = vector.extract_strided_slice %70 {offsets = [0, 384], sizes = [8, 128], strides = [1, 1]} : vector<8x512xf32> to vector<8x128xf32>
    %86 = arith.negf %85 : vector<8x128xf32>
    %87 = math.exp %86 : vector<8x128xf32>
    %cst_30 = arith.constant 1.000000e+00 : f32
    %88 = vector.broadcast %cst_30 : f32 to vector<8x128xf32>
    %89 = arith.addf %88, %87 : vector<8x128xf32>
    %90 = arith.divf %88, %89 : vector<8x128xf32>
    %91 = arith.mulf %82, %64 : vector<8x128xf32>
    %92 = arith.mulf %76, %84 : vector<8x128xf32>
    %93 = arith.addf %91, %92 : vector<8x128xf32>
    %94 = math.tanh %93 : vector<8x128xf32>
    %95 = arith.mulf %90, %94 : vector<8x128xf32>
    %c24 = arith.constant 24 : index
    %c0_31 = arith.constant 0 : index
    %96 = vector.load %arg7[%c24, %c0_31] : memref<64x512xf32, #tpu.memory_space<vmem>>, vector<8x512xf32>
    %c0_32 = arith.constant 0 : index
    %c0_33 = arith.constant 0 : index
    %97 = vector.load %arg2[%c0_32, %c0_33] : memref<128x512xf32, #tpu.memory_space<vmem>>, vector<128x512xf32>
    %cst_34 = arith.constant dense<0.000000e+00> : vector<8x512xf32>
    %98 = tpu.matmul %95, %97, %cst_34 {dimension_numbers = #tpu.dot_dimension_numbers<[1], [0], [0], [1], [0, 0, 1, 1], [], []>} : vector<8x128xf32>, vector<128x512xf32>, vector<8x512xf32> -> vector<8x512xf32>
    %99 = arith.addf %96, %98 : vector<8x512xf32>
    %100 = vector.extract_strided_slice %99 {offsets = [0, 0], sizes = [8, 128], strides = [1, 1]} : vector<8x512xf32> to vector<8x128xf32>
    %101 = arith.negf %100 : vector<8x128xf32>
    %102 = math.exp %101 : vector<8x128xf32>
    %cst_35 = arith.constant 1.000000e+00 : f32
    %103 = vector.broadcast %cst_35 : f32 to vector<8x128xf32>
    %104 = arith.addf %103, %102 : vector<8x128xf32>
    %105 = arith.divf %103, %104 : vector<8x128xf32>
    %106 = vector.extract_strided_slice %99 {offsets = [0, 128], sizes = [8, 128], strides = [1, 1]} : vector<8x512xf32> to vector<8x128xf32>
    %107 = arith.negf %106 : vector<8x128xf32>
    %108 = math.exp %107 : vector<8x128xf32>
    %cst_36 = arith.constant 1.000000e+00 : f32
    %109 = vector.broadcast %cst_36 : f32 to vector<8x128xf32>
    %110 = arith.addf %109, %108 : vector<8x128xf32>
    %111 = arith.divf %109, %110 : vector<8x128xf32>
    %112 = vector.extract_strided_slice %99 {offsets = [0, 256], sizes = [8, 128], strides = [1, 1]} : vector<8x512xf32> to vector<8x128xf32>
    %113 = math.tanh %112 : vector<8x128xf32>
    %114 = vector.extract_strided_slice %99 {offsets = [0, 384], sizes = [8, 128], strides = [1, 1]} : vector<8x512xf32> to vector<8x128xf32>
    %115 = arith.negf %114 : vector<8x128xf32>
    %116 = math.exp %115 : vector<8x128xf32>
    %cst_37 = arith.constant 1.000000e+00 : f32
    %117 = vector.broadcast %cst_37 : f32 to vector<8x128xf32>
    %118 = arith.addf %117, %116 : vector<8x128xf32>
    %119 = arith.divf %117, %118 : vector<8x128xf32>
    %120 = arith.mulf %111, %93 : vector<8x128xf32>
    %121 = arith.mulf %105, %113 : vector<8x128xf32>
    %122 = arith.addf %120, %121 : vector<8x128xf32>
    %123 = math.tanh %122 : vector<8x128xf32>
    %124 = arith.mulf %119, %123 : vector<8x128xf32>
    %c32 = arith.constant 32 : index
    %c0_38 = arith.constant 0 : index
    %125 = vector.load %arg7[%c32, %c0_38] : memref<64x512xf32, #tpu.memory_space<vmem>>, vector<8x512xf32>
    %c0_39 = arith.constant 0 : index
    %c0_40 = arith.constant 0 : index
    %126 = vector.load %arg2[%c0_39, %c0_40] : memref<128x512xf32, #tpu.memory_space<vmem>>, vector<128x512xf32>
    %cst_41 = arith.constant dense<0.000000e+00> : vector<8x512xf32>
    %127 = tpu.matmul %124, %126, %cst_41 {dimension_numbers = #tpu.dot_dimension_numbers<[1], [0], [0], [1], [0, 0, 1, 1], [], []>} : vector<8x128xf32>, vector<128x512xf32>, vector<8x512xf32> -> vector<8x512xf32>
    %128 = arith.addf %125, %127 : vector<8x512xf32>
    %129 = vector.extract_strided_slice %128 {offsets = [0, 0], sizes = [8, 128], strides = [1, 1]} : vector<8x512xf32> to vector<8x128xf32>
    %130 = arith.negf %129 : vector<8x128xf32>
    %131 = math.exp %130 : vector<8x128xf32>
    %cst_42 = arith.constant 1.000000e+00 : f32
    %132 = vector.broadcast %cst_42 : f32 to vector<8x128xf32>
    %133 = arith.addf %132, %131 : vector<8x128xf32>
    %134 = arith.divf %132, %133 : vector<8x128xf32>
    %135 = vector.extract_strided_slice %128 {offsets = [0, 128], sizes = [8, 128], strides = [1, 1]} : vector<8x512xf32> to vector<8x128xf32>
    %136 = arith.negf %135 : vector<8x128xf32>
    %137 = math.exp %136 : vector<8x128xf32>
    %cst_43 = arith.constant 1.000000e+00 : f32
    %138 = vector.broadcast %cst_43 : f32 to vector<8x128xf32>
    %139 = arith.addf %138, %137 : vector<8x128xf32>
    %140 = arith.divf %138, %139 : vector<8x128xf32>
    %141 = vector.extract_strided_slice %128 {offsets = [0, 256], sizes = [8, 128], strides = [1, 1]} : vector<8x512xf32> to vector<8x128xf32>
    %142 = math.tanh %141 : vector<8x128xf32>
    %143 = vector.extract_strided_slice %128 {offsets = [0, 384], sizes = [8, 128], strides = [1, 1]} : vector<8x512xf32> to vector<8x128xf32>
    %144 = arith.negf %143 : vector<8x128xf32>
    %145 = math.exp %144 : vector<8x128xf32>
    %cst_44 = arith.constant 1.000000e+00 : f32
    %146 = vector.broadcast %cst_44 : f32 to vector<8x128xf32>
    %147 = arith.addf %146, %145 : vector<8x128xf32>
    %148 = arith.divf %146, %147 : vector<8x128xf32>
    %149 = arith.mulf %140, %122 : vector<8x128xf32>
    %150 = arith.mulf %134, %142 : vector<8x128xf32>
    %151 = arith.addf %149, %150 : vector<8x128xf32>
    %152 = math.tanh %151 : vector<8x128xf32>
    %153 = arith.mulf %148, %152 : vector<8x128xf32>
    %c40 = arith.constant 40 : index
    %c0_45 = arith.constant 0 : index
    %154 = vector.load %arg7[%c40, %c0_45] : memref<64x512xf32, #tpu.memory_space<vmem>>, vector<8x512xf32>
    %c0_46 = arith.constant 0 : index
    %c0_47 = arith.constant 0 : index
    %155 = vector.load %arg2[%c0_46, %c0_47] : memref<128x512xf32, #tpu.memory_space<vmem>>, vector<128x512xf32>
    %cst_48 = arith.constant dense<0.000000e+00> : vector<8x512xf32>
    %156 = tpu.matmul %153, %155, %cst_48 {dimension_numbers = #tpu.dot_dimension_numbers<[1], [0], [0], [1], [0, 0, 1, 1], [], []>} : vector<8x128xf32>, vector<128x512xf32>, vector<8x512xf32> -> vector<8x512xf32>
    %157 = arith.addf %154, %156 : vector<8x512xf32>
    %158 = vector.extract_strided_slice %157 {offsets = [0, 0], sizes = [8, 128], strides = [1, 1]} : vector<8x512xf32> to vector<8x128xf32>
    %159 = arith.negf %158 : vector<8x128xf32>
    %160 = math.exp %159 : vector<8x128xf32>
    %cst_49 = arith.constant 1.000000e+00 : f32
    %161 = vector.broadcast %cst_49 : f32 to vector<8x128xf32>
    %162 = arith.addf %161, %160 : vector<8x128xf32>
    %163 = arith.divf %161, %162 : vector<8x128xf32>
    %164 = vector.extract_strided_slice %157 {offsets = [0, 128], sizes = [8, 128], strides = [1, 1]} : vector<8x512xf32> to vector<8x128xf32>
    %165 = arith.negf %164 : vector<8x128xf32>
    %166 = math.exp %165 : vector<8x128xf32>
    %cst_50 = arith.constant 1.000000e+00 : f32
    %167 = vector.broadcast %cst_50 : f32 to vector<8x128xf32>
    %168 = arith.addf %167, %166 : vector<8x128xf32>
    %169 = arith.divf %167, %168 : vector<8x128xf32>
    %170 = vector.extract_strided_slice %157 {offsets = [0, 256], sizes = [8, 128], strides = [1, 1]} : vector<8x512xf32> to vector<8x128xf32>
    %171 = math.tanh %170 : vector<8x128xf32>
    %172 = vector.extract_strided_slice %157 {offsets = [0, 384], sizes = [8, 128], strides = [1, 1]} : vector<8x512xf32> to vector<8x128xf32>
    %173 = arith.negf %172 : vector<8x128xf32>
    %174 = math.exp %173 : vector<8x128xf32>
    %cst_51 = arith.constant 1.000000e+00 : f32
    %175 = vector.broadcast %cst_51 : f32 to vector<8x128xf32>
    %176 = arith.addf %175, %174 : vector<8x128xf32>
    %177 = arith.divf %175, %176 : vector<8x128xf32>
    %178 = arith.mulf %169, %151 : vector<8x128xf32>
    %179 = arith.mulf %163, %171 : vector<8x128xf32>
    %180 = arith.addf %178, %179 : vector<8x128xf32>
    %181 = math.tanh %180 : vector<8x128xf32>
    %182 = arith.mulf %177, %181 : vector<8x128xf32>
    %c48 = arith.constant 48 : index
    %c0_52 = arith.constant 0 : index
    %183 = vector.load %arg7[%c48, %c0_52] : memref<64x512xf32, #tpu.memory_space<vmem>>, vector<8x512xf32>
    %c0_53 = arith.constant 0 : index
    %c0_54 = arith.constant 0 : index
    %184 = vector.load %arg2[%c0_53, %c0_54] : memref<128x512xf32, #tpu.memory_space<vmem>>, vector<128x512xf32>
    %cst_55 = arith.constant dense<0.000000e+00> : vector<8x512xf32>
    %185 = tpu.matmul %182, %184, %cst_55 {dimension_numbers = #tpu.dot_dimension_numbers<[1], [0], [0], [1], [0, 0, 1, 1], [], []>} : vector<8x128xf32>, vector<128x512xf32>, vector<8x512xf32> -> vector<8x512xf32>
    %186 = arith.addf %183, %185 : vector<8x512xf32>
    %187 = vector.extract_strided_slice %186 {offsets = [0, 0], sizes = [8, 128], strides = [1, 1]} : vector<8x512xf32> to vector<8x128xf32>
    %188 = arith.negf %187 : vector<8x128xf32>
    %189 = math.exp %188 : vector<8x128xf32>
    %cst_56 = arith.constant 1.000000e+00 : f32
    %190 = vector.broadcast %cst_56 : f32 to vector<8x128xf32>
    %191 = arith.addf %190, %189 : vector<8x128xf32>
    %192 = arith.divf %190, %191 : vector<8x128xf32>
    %193 = vector.extract_strided_slice %186 {offsets = [0, 128], sizes = [8, 128], strides = [1, 1]} : vector<8x512xf32> to vector<8x128xf32>
    %194 = arith.negf %193 : vector<8x128xf32>
    %195 = math.exp %194 : vector<8x128xf32>
    %cst_57 = arith.constant 1.000000e+00 : f32
    %196 = vector.broadcast %cst_57 : f32 to vector<8x128xf32>
    %197 = arith.addf %196, %195 : vector<8x128xf32>
    %198 = arith.divf %196, %197 : vector<8x128xf32>
    %199 = vector.extract_strided_slice %186 {offsets = [0, 256], sizes = [8, 128], strides = [1, 1]} : vector<8x512xf32> to vector<8x128xf32>
    %200 = math.tanh %199 : vector<8x128xf32>
    %201 = vector.extract_strided_slice %186 {offsets = [0, 384], sizes = [8, 128], strides = [1, 1]} : vector<8x512xf32> to vector<8x128xf32>
    %202 = arith.negf %201 : vector<8x128xf32>
    %203 = math.exp %202 : vector<8x128xf32>
    %cst_58 = arith.constant 1.000000e+00 : f32
    %204 = vector.broadcast %cst_58 : f32 to vector<8x128xf32>
    %205 = arith.addf %204, %203 : vector<8x128xf32>
    %206 = arith.divf %204, %205 : vector<8x128xf32>
    %207 = arith.mulf %198, %180 : vector<8x128xf32>
    %208 = arith.mulf %192, %200 : vector<8x128xf32>
    %209 = arith.addf %207, %208 : vector<8x128xf32>
    %210 = math.tanh %209 : vector<8x128xf32>
    %211 = arith.mulf %206, %210 : vector<8x128xf32>
    %c56 = arith.constant 56 : index
    %c0_59 = arith.constant 0 : index
    %212 = vector.load %arg7[%c56, %c0_59] : memref<64x512xf32, #tpu.memory_space<vmem>>, vector<8x512xf32>
    %c0_60 = arith.constant 0 : index
    %c0_61 = arith.constant 0 : index
    %213 = vector.load %arg2[%c0_60, %c0_61] : memref<128x512xf32, #tpu.memory_space<vmem>>, vector<128x512xf32>
    %cst_62 = arith.constant dense<0.000000e+00> : vector<8x512xf32>
    %214 = tpu.matmul %211, %213, %cst_62 {dimension_numbers = #tpu.dot_dimension_numbers<[1], [0], [0], [1], [0, 0, 1, 1], [], []>} : vector<8x128xf32>, vector<128x512xf32>, vector<8x512xf32> -> vector<8x512xf32>
    %215 = arith.addf %212, %214 : vector<8x512xf32>
    %216 = vector.extract_strided_slice %215 {offsets = [0, 0], sizes = [8, 128], strides = [1, 1]} : vector<8x512xf32> to vector<8x128xf32>
    %217 = arith.negf %216 : vector<8x128xf32>
    %218 = math.exp %217 : vector<8x128xf32>
    %cst_63 = arith.constant 1.000000e+00 : f32
    %219 = vector.broadcast %cst_63 : f32 to vector<8x128xf32>
    %220 = arith.addf %219, %218 : vector<8x128xf32>
    %221 = arith.divf %219, %220 : vector<8x128xf32>
    %222 = vector.extract_strided_slice %215 {offsets = [0, 128], sizes = [8, 128], strides = [1, 1]} : vector<8x512xf32> to vector<8x128xf32>
    %223 = arith.negf %222 : vector<8x128xf32>
    %224 = math.exp %223 : vector<8x128xf32>
    %cst_64 = arith.constant 1.000000e+00 : f32
    %225 = vector.broadcast %cst_64 : f32 to vector<8x128xf32>
    %226 = arith.addf %225, %224 : vector<8x128xf32>
    %227 = arith.divf %225, %226 : vector<8x128xf32>
    %228 = vector.extract_strided_slice %215 {offsets = [0, 256], sizes = [8, 128], strides = [1, 1]} : vector<8x512xf32> to vector<8x128xf32>
    %229 = math.tanh %228 : vector<8x128xf32>
    %230 = vector.extract_strided_slice %215 {offsets = [0, 384], sizes = [8, 128], strides = [1, 1]} : vector<8x512xf32> to vector<8x128xf32>
    %231 = arith.negf %230 : vector<8x128xf32>
    %232 = math.exp %231 : vector<8x128xf32>
    %cst_65 = arith.constant 1.000000e+00 : f32
    %233 = vector.broadcast %cst_65 : f32 to vector<8x128xf32>
    %234 = arith.addf %233, %232 : vector<8x128xf32>
    %235 = arith.divf %233, %234 : vector<8x128xf32>
    %236 = arith.mulf %227, %209 : vector<8x128xf32>
    %237 = arith.mulf %221, %229 : vector<8x128xf32>
    %238 = arith.addf %236, %237 : vector<8x128xf32>
    %239 = math.tanh %238 : vector<8x128xf32>
    %240 = arith.mulf %235, %239 : vector<8x128xf32>
    %c0_66 = arith.constant 0 : index
    %c0_67 = arith.constant 0 : index
    %241 = vector.load %arg4[%c0_66, %c0_67] : memref<128x128xf32, #tpu.memory_space<vmem>>, vector<128x128xf32>
    %cst_68 = arith.constant dense<0.000000e+00> : vector<8x128xf32>
    %242 = tpu.matmul %240, %241, %cst_68 {dimension_numbers = #tpu.dot_dimension_numbers<[1], [0], [0], [1], [0, 0, 1, 1], [], []>} : vector<8x128xf32>, vector<128x128xf32>, vector<8x128xf32> -> vector<8x128xf32>
    %c0_69 = arith.constant 0 : index
    %c0_70 = arith.constant 0 : index
    %243 = vector.load %arg5[%c0_69, %c0_70] : memref<1x128xf32, #tpu.memory_space<vmem>>, vector<1x128xf32>
    %244 = vector.broadcast %243 : vector<1x128xf32> to vector<8x128xf32>
    %245 = arith.addf %242, %244 : vector<8x128xf32>
    %c0_71 = arith.constant 0 : index
    %c0_72 = arith.constant 0 : index
    %246 = vector.load %arg6[%c0_71, %c0_72] : memref<8x128xf32, #tpu.memory_space<vmem>>, vector<8x128xf32>
    tpu.vector_store %arg6[%c0_71, %c0_72], %245 {strides = array<i32>} : memref<8x128xf32, #tpu.memory_space<vmem>>, vector<8x128xf32>,
    return
  }
}

</mosaic_0001>

<bundles_post_ra>
// kernel: rnnet_forward.1
= control target key start
LH: loop header
LB: loop body
LE: loop exit
PB: predicated region body
PF: predicated region fallthrough
CT: control target
= control target key end

     0   :  { %11 = vsyncpa [#allocation4], 0  ;;  %s3453_s0 = inlined_call_operand.vmem [shape: f32[64,128], index: 0, kind: input, shape index: {}]   ;;  %s3454_s1 = inlined_call_operand.hbm [shape: f32[128,512], index: 1, kind: input, shape index: {}]   ;;  %s3455_s2 = inlined_call_operand.hbm [shape: f32[128,512], index: 2, kind: input, shape index: {}]   ;;  %s3456_s3 = inlined_call_operand.vmem [shape: f32[1,512], index: 3, kind: input, shape index: {}]   ;;  %s3457_s4 = inlined_call_operand.vmem [shape: f32[128,128], index: 4, kind: input, shape index: {}]   ;;  %s3458_s5 = inlined_call_operand.vmem [shape: f32[1,128], index: 5, kind: input, shape index: {}]   ;;  %s3459_s6 = inlined_call_operand.vmem [shape: f32[8,128], index: 6, kind: output, shape index: {}]  }
   0x1   :  { %12 = vsyncpa [#allocation6], 0  ;;  %s2883_s21 = smov [#allocation3]   ;;  %s2835_s25 = scalar_lea.hbm %s3454_s1, 8192 }
   0x2   :  { %s20_s22 = sshll.u32 %s2883_s21, 4  ;;  %p2836_p0 = scmp.ne.s32.totalorder %s3454_s1, %s2835_s25  ;;  %s21_s22 = int_to_ptr.vmem [resolvable:$true] %s20_s22 }
   0x3   :  { %p2839_p1 = scmp.lt.u32.totalorder %s2835_s25, %s3454_s1 }
   0x5   :  { %p2841_p2 = pnand %p2839_p1, %p2836_p0 }
   0x7   :  { %2844 = shalt.err (!%p2841_p2)
}
   0x8   :  { %s2845_s30 = scalar_lea.vmem %s21_s22, 8192  ;;  %p2850_p4 = scmp.lt.s32.totalorder %s21_s22, %s21_s22 }
   0x9   :  { %p2846_p3 = scmp.ne.s32.totalorder %s21_s22, %s2845_s30  ;;  %p2851_p5 = scmp.lt.s32.totalorder %s2845_s30, %s2845_s30 }
   0xb   :  { %p2852_p6 = por %p2851_p5, %p2850_p4 }
   0xd   :  { %p2853_p7 = pnand %p2852_p6, %p2846_p3 }
   0xf   :  { %2856 = shalt.err (!%p2853_p7)
}
  0x10   :  { %s2884_s7 = smov 512   ;;  %s2885_s8 = smov 32  }
  0x11   :  { %26 = dma.hbm_to_vmem [thread:$0]  %s3454_s1, 8192, %s21_s22, [#allocation4], %s2884_s7, %s2884_s7, %s2885_s8  }
  0x12   :  { %s2886_s11 = smov [#allocation5]   ;;  %s2857_s15 = scalar_lea.hbm %s3455_s2, 8192 }
  0x13   :  { %s32_s12 = sshll.u32 %s2886_s11, 4  ;;  %p2858_p8 = scmp.ne.s32.totalorder %s3455_s2, %s2857_s15  ;;  %s33_s12 = int_to_ptr.vmem [resolvable:$true] %s32_s12 }
  0x14   :  { %p2861_p9 = scmp.lt.u32.totalorder %s2857_s15, %s3455_s2 }
  0x16   :  { %p2863_p10 = pnand %p2861_p9, %p2858_p8 }
  0x18   :  { %2866 = shalt.err (!%p2863_p10)
}
  0x19   :  { %s2867_s20 = scalar_lea.vmem %s33_s12, 8192  ;;  %p2872_p12 = scmp.lt.s32.totalorder %s33_s12, %s33_s12 }
  0x1a   :  { %p2868_p11 = scmp.ne.s32.totalorder %s33_s12, %s2867_s20  ;;  %p2873_p13 = scmp.lt.s32.totalorder %s2867_s20, %s2867_s20 }
  0x1c   :  { %p2874_p0 = por %p2873_p13, %p2872_p12 }
  0x1e   :  { %p2875_p1 = pnand %p2874_p0, %p2868_p11 }
  0x20   :  { %2878 = shalt.err (!%p2875_p1)
}
  0x21   :  { %38 = dma.hbm_to_vmem [thread:$0]  %s3455_s2, 8192, %s33_s12, [#allocation6], %s2884_s7, %s2884_s7, %s2885_s8  }
  0x22   :  { %2879 = dma.done.wait [#allocation4], 8192  }
  0x23   :  { %2880 = vsyncadd [#allocation4], 4294959104 }
  0x24   :  { %2881 = dma.done.wait [#allocation6], 8192  }
  0x25   :  { %2882 = vsyncadd [#allocation6], 4294959104  ;;  %v2887_v0 = vmov 0.0   ;;  %v60_v1 = vld [vmem:[#allocation3 + $0x8] sm:$0xff]  ;;  %v62_v3 = vld [vmem:[#allocation3 + $0x18] sm:$0xff]  ;;  %vm2889_vm0 = vmmov 0  }
  0x26   :  { %209 = vmatprep.mubr.f32.mxu0 %v2887_v0  ;;  %322 = vmatprep.mubr.f32.mxu1 %v2887_v0  ;;  %v64_v2 = vld [vmem:[#allocation3 + $0x28] sm:$0xff]  ;;  %v66_v5 = vld [vmem:[#allocation3 + $0x38] sm:$0xff]  ;;  %v59_v6 = vld [vmem:[#allocation3] sm:$0xff] }
  0x27   :  { %v2036_v4 = vpack.c.bf16 %v64_v2, %v60_v1  ;;  %v63_v7 = vld [vmem:[#allocation3 + $0x20] sm:$0xff]  ;;  %v2068_v8 = vpack.c.bf16 %v66_v5, %v62_v3  ;;  %v61_v10 = vld [vmem:[#allocation3 + $0x10] sm:$0xff]  ;;  %v68_v12 = vld [vmem:[#allocation3 + $0x48] sm:$0xff] }
  0x28   :  { %v2038_v9 = vpack.c.bf16 %v63_v7, %v59_v6  ;;  %v65_v11 = vld [vmem:[#allocation3 + $0x30] sm:$0xff]  ;;  %v72_v14 = vld [vmem:[#allocation3 + $0x68] sm:$0xff]  ;;  %v70_v15 = vld [vmem:[#allocation3 + $0x58] sm:$0xff] }
  0x29   :  { %2037 = vmatprep.subr.bf16.mxu0 %v2036_v4  ;;  %v2070_v13 = vpack.c.bf16 %v65_v11, %v61_v10  ;;  %v74_v16 = vld [vmem:[#allocation3 + $0x78] sm:$0xff]  ;;  %2069 = vmatprep.subr.bf16.mxu1 %v2068_v8  ;;  %v2040_v17 = vpack.c.bf16 %v72_v14, %v68_v12  ;;  %v67_v19 = vld [vmem:[#allocation3 + $0x40] sm:$0xff]  ;;  %v69_v21 = vld [vmem:[#allocation3 + $0x50] sm:$0xff] }
  0x2a   :  { %2039 = vmatpush1.bf16.msra.mxu0 %v2038_v9  ;;  %v2072_v18 = vpack.c.bf16 %v74_v16, %v70_v15  ;;  %v71_v20 = vld [vmem:[#allocation3 + $0x60] sm:$0xff]  ;;  %v73_v23 = vld [vmem:[#allocation3 + $0x70] sm:$0xff]  ;;  %v76_v24 = vld [vmem:[#allocation3 + $0x88] sm:$0xff] }
  0x2b   :  { %2071 = vmatpush1.bf16.msra.mxu1 %v2070_v13  ;;  %v2042_v22 = vpack.c.bf16 %v71_v20, %v67_v19  ;;  %v80_v25 = vld [vmem:[#allocation3 + $0xa8] sm:$0xff]  ;;  %2041 = vmatprep.subr.bf16.mxu0 %v2040_v17  ;;  %v2074_v26 = vpack.c.bf16 %v73_v23, %v69_v21  ;;  %v78_v28 = vld [vmem:[#allocation3 + $0x98] sm:$0xff]  ;;  %v75_v30 = vld [vmem:[#allocation3 + $0x80] sm:$0xff] }
  0x2c   :  { %2073 = vmatprep.subr.bf16.mxu1 %v2072_v18  ;;  %v2044_v27 = vpack.c.bf16 %v80_v25, %v76_v24  ;;  %v82_v29 = vld [vmem:[#allocation3 + $0xb8] sm:$0xff]  ;;  %v79_v32 = vld [vmem:[#allocation3 + $0xa0] sm:$0xff]  ;;  %v77_v33 = vld [vmem:[#allocation3 + $0x90] sm:$0xff] }
  0x2d   :  { %v2076_v31 = vpack.c.bf16 %v82_v29, %v78_v28  ;;  %v81_v34 = vld [vmem:[#allocation3 + $0xb0] sm:$0xff]  ;;  %v2046_v35 = vpack.c.bf16 %v79_v32, %v75_v30  ;;  %v84_v36 = vld [vmem:[#allocation3 + $0xc8] sm:$0xff]  ;;  %v86_v38 = vld [vmem:[#allocation3 + $0xd8] sm:$0xff] }
  0x2e   :  { %2043 = vmatpush1.bf16.msra.mxu0 %v2042_v22  ;;  %v88_v37 = vld [vmem:[#allocation3 + $0xe8] sm:$0xff]  ;;  %v2078_v39 = vpack.c.bf16 %v81_v34, %v77_v33  ;;  %v90_v41 = vld [vmem:[#allocation3 + $0xf8] sm:$0xff]  ;;  %v83_v42 = vld [vmem:[#allocation3 + $0xc0] sm:$0xff] }
  0x2f   :  { %2075 = vmatpush1.bf16.msra.mxu1 %v2074_v26  ;;  %2045 = vmatprep.subr.bf16.mxu0 %v2044_v27  ;;  %v2048_v40 = vpack.c.bf16 %v88_v37, %v84_v36  ;;  %v87_v43 = vld [vmem:[#allocation3 + $0xe0] sm:$0xff]  ;;  %v2080_v44 = vpack.c.bf16 %v90_v41, %v86_v38  ;;  %v85_v45 = vld [vmem:[#allocation3 + $0xd0] sm:$0xff]  ;;  %v92_v47 = vld [vmem:[#allocation3 + $0x108] sm:$0xff] }
  0x30   :  { %2077 = vmatprep.subr.bf16.mxu1 %v2076_v31  ;;  %v89_v46 = vld [vmem:[#allocation3 + $0xf0] sm:$0xff]  ;;  %v96_v48 = vld [vmem:[#allocation3 + $0x128] sm:$0xff]  ;;  %v94_v49 = vld [vmem:[#allocation3 + $0x118] sm:$0xff]  ;;  %v2050_v51 = vpack.c.bf16 %v87_v43, %v83_v42 }
  0x31   :  { %v98_v50 = vld [vmem:[#allocation3 + $0x138] sm:$0xff]  ;;  %v2082_v52 = vpack.c.bf16 %v89_v46, %v85_v45  ;;  %v2052_v53 = vpack.c.bf16 %v96_v48, %v92_v47  ;;  %v91_v54 = vld [vmem:[#allocation3 + $0x100] sm:$0xff]  ;;  %v93_v56 = vld [vmem:[#allocation3 + $0x110] sm:$0xff] }
  0x32   :  { %2047 = vmatpush1.bf16.msra.mxu0 %v2046_v35  ;;  %v95_v55 = vld [vmem:[#allocation3 + $0x120] sm:$0xff]  ;;  %v2084_v57 = vpack.c.bf16 %v98_v50, %v94_v49  ;;  %v97_v58 = vld [vmem:[#allocation3 + $0x130] sm:$0xff]  ;;  %v100_v59 = vld [vmem:[#allocation3 + $0x148] sm:$0xff] }
  0x33   :  { %2079 = vmatpush1.bf16.msra.mxu1 %v2078_v39  ;;  %2049 = vmatprep.subr.bf16.mxu0 %v2048_v40  ;;  %v104_v60 = vld [vmem:[#allocation3 + $0x168] sm:$0xff]  ;;  %v102_v61 = vld [vmem:[#allocation3 + $0x158] sm:$0xff]  ;;  %v2054_v63 = vpack.c.bf16 %v95_v55, %v91_v54  ;;  %v2086_v1 = vpack.c.bf16 %v97_v58, %v93_v56  ;;  %v99_v3 = vld [vmem:[#allocation3 + $0x140] sm:$0xff] }
  0x34   :  { %2081 = vmatprep.subr.bf16.mxu1 %v2080_v44  ;;  %v106_v62 = vld [vmem:[#allocation3 + $0x178] sm:$0xff]  ;;  %v2056_v2 = vpack.c.bf16 %v104_v60, %v100_v59  ;;  %v103_v4 = vld [vmem:[#allocation3 + $0x160] sm:$0xff]  ;;  %v101_v5 = vld [vmem:[#allocation3 + $0x150] sm:$0xff] }
  0x35   :  { %v2088_v6 = vpack.c.bf16 %v106_v62, %v102_v61  ;;  %v105_v7 = vld [vmem:[#allocation3 + $0x170] sm:$0xff]  ;;  %v108_v8 = vld [vmem:[#allocation3 + $0x188] sm:$0xff]  ;;  %v110_v10 = vld [vmem:[#allocation3 + $0x198] sm:$0xff]  ;;  %v2058_v12 = vpack.c.bf16 %v103_v4, %v99_v3 }
  0x36   :  { %2051 = vmatpush1.bf16.msra.mxu0 %v2050_v51  ;;  %v112_v9 = vld [vmem:[#allocation3 + $0x1a8] sm:$0xff]  ;;  %v114_v11 = vld [vmem:[#allocation3 + $0x1b8] sm:$0xff]  ;;  %v2090_v13 = vpack.c.bf16 %v105_v7, %v101_v5  ;;  %v107_v15 = vld [vmem:[#allocation3 + $0x180] sm:$0xff] }
  0x37   :  { %2083 = vmatpush1.bf16.msra.mxu1 %v2082_v52  ;;  %2053 = vmatprep.subr.bf16.mxu0 %v2052_v53  ;;  %v2060_v14 = vpack.c.bf16 %v112_v9, %v108_v8  ;;  %v111_v16 = vld [vmem:[#allocation3 + $0x1a0] sm:$0xff]  ;;  %v109_v17 = vld [vmem:[#allocation3 + $0x190] sm:$0xff]  ;;  %v2092_v18 = vpack.c.bf16 %v114_v11, %v110_v10  ;;  %v116_v20 = vld [vmem:[#allocation3 + $0x1c8] sm:$0xff] }
  0x38   :  { %2085 = vmatprep.subr.bf16.mxu1 %v2084_v57  ;;  %v113_v19 = vld [vmem:[#allocation3 + $0x1b0] sm:$0xff]  ;;  %v120_v21 = vld [vmem:[#allocation3 + $0x1e8] sm:$0xff]  ;;  %v118_v22 = vld [vmem:[#allocation3 + $0x1d8] sm:$0xff]  ;;  %v2062_v24 = vpack.c.bf16 %v111_v16, %v107_v15 }
  0x39   :  { %v122_v23 = vld [vmem:[#allocation3 + $0x1f8] sm:$0xff]  ;;  %v2094_v25 = vpack.c.bf16 %v113_v19, %v109_v17  ;;  %v2064_v26 = vpack.c.bf16 %v120_v21, %v116_v20  ;;  %v115_v27 = vld [vmem:[#allocation3 + $0x1c0] sm:$0xff]  ;;  %v117_v29 = vld [vmem:[#allocation3 + $0x1d0] sm:$0xff] }
  0x3a   :  { %2055 = vmatpush1.bf16.msra.mxu0 %v2054_v63  ;;  %v119_v28 = vld [vmem:[#allocation3 + $0x1e0] sm:$0xff]  ;;  %v2096_v30 = vpack.c.bf16 %v122_v23, %v118_v22  ;;  %v121_v31 = vld [vmem:[#allocation3 + $0x1f0] sm:$0xff]  ;;  %v408_v32 = vld [vmem:[#allocation5 + $0x8] sm:$0xff] }
  0x3b   :  { %2087 = vmatpush1.bf16.msra.mxu1 %v2086_v1  ;;  %2057 = vmatprep.subr.bf16.mxu0 %v2056_v2  ;;  %v412_v33 = vld [vmem:[#allocation5 + $0x28] sm:$0xff]  ;;  %v410_v34 = vld [vmem:[#allocation5 + $0x18] sm:$0xff]  ;;  %v2066_v36 = vpack.c.bf16 %v119_v28, %v115_v27  ;;  %v2098_v37 = vpack.c.bf16 %v121_v31, %v117_v29  ;;  %v407_v39 = vld [vmem:[#allocation5] sm:$0xff] }
  0x3c   :  { %2089 = vmatprep.subr.bf16.mxu1 %v2088_v6  ;;  %v414_v35 = vld [vmem:[#allocation5 + $0x38] sm:$0xff]  ;;  %v2951_v38 = vpack.c.bf16 %v412_v33, %v408_v32  ;;  %v411_v40 = vld [vmem:[#allocation5 + $0x20] sm:$0xff]  ;;  %v409_v42 = vld [vmem:[#allocation5 + $0x10] sm:$0xff] }
  0x3d   :  { %v2953_v41 = vpack.c.bf16 %v414_v35, %v410_v34  ;;  %v413_v43 = vld [vmem:[#allocation5 + $0x30] sm:$0xff]  ;;  %v416_v44 = vld [vmem:[#allocation5 + $0x48] sm:$0xff]  ;;  %v51_v46 = vld [vmem:[%s3453_s0] sm:$0xff]  ;;  %v2958_v47 = vpack.c.bf16 %v411_v40, %v407_v39 }
  0x3e   :  { %2059 = vmatpush1.bf16.msra.mxu0 %v2058_v12  ;;  %v420_v45 = vld [vmem:[#allocation5 + $0x68] sm:$0xff]  ;;  %v418_v48 = vld [vmem:[#allocation5 + $0x58] sm:$0xff]  ;;  %v2961_v50 = vpack.c.bf16 %v413_v43, %v409_v42  ;;  %v415_v51 = vld [vmem:[#allocation5 + $0x40] sm:$0xff] }
  0x3f   :  { %2091 = vmatpush1.bf16.msra.mxu1 %v2090_v13  ;;  %2061 = vmatprep.subr.bf16.mxu0 %v2060_v14  ;;  %v422_v49 = vld [vmem:[#allocation5 + $0x78] sm:$0xff]  ;;  %v419_v52 = vld [vmem:[#allocation5 + $0x60] sm:$0xff]  ;;  %v2964_v53 = vpack.c.bf16 %v420_v45, %v416_v44  ;;  %v417_v54 = vld [vmem:[#allocation5 + $0x50] sm:$0xff] }
  0x40   :  { %2093 = vmatprep.subr.bf16.mxu1 %v2092_v18  ;;  %v421_v55 = vld [vmem:[#allocation5 + $0x70] sm:$0xff]  ;;  %v2966_v56 = vpack.c.bf16 %v422_v49, %v418_v48  ;;  %v424_v57 = vld [vmem:[#allocation5 + $0x88] sm:$0xff]  ;;  %v2972_v60 = vpack.c.bf16 %v419_v52, %v415_v51  ;;  %v426_v61 = vld [vmem:[#allocation5 + $0x98] sm:$0xff] }
  0x41   :  { %v428_v58 = vld [vmem:[#allocation5 + $0xa8] sm:$0xff]  ;;  %v430_v62 = vld [vmem:[#allocation5 + $0xb8] sm:$0xff]  ;;  %v2976_v63 = vpack.c.bf16 %v421_v55, %v417_v54  ;;  %v423_v1 = vld [vmem:[#allocation5 + $0x80] sm:$0xff] }
  0x42   :  { %2063 = vmatpush1.bf16.msra.mxu0 %v2062_v24  ;;  %v52_v59 = vld [vmem:[%s3453_s0 + $0x8] sm:$0xff]  ;;  %v427_v2 = vld [vmem:[#allocation5 + $0xa0] sm:$0xff]  ;;  %v2980_v3 = vpack.c.bf16 %v428_v58, %v424_v57  ;;  %v425_v4 = vld [vmem:[#allocation5 + $0x90] sm:$0xff]  ;;  %v2983_v6 = vpack.c.bf16 %v430_v62, %v426_v61 }
  0x43   :  { %2095 = vmatpush1.bf16.msra.mxu1 %v2094_v25  ;;  %2065 = vmatprep.subr.bf16.mxu0 %v2064_v26  ;;  %v429_v5 = vld [vmem:[#allocation5 + $0xb0] sm:$0xff]  ;;  %v432_v7 = vld [vmem:[#allocation5 + $0xc8] sm:$0xff]  ;;  %v2989_v10 = vpack.c.bf16 %v427_v2, %v423_v1  ;;  %v434_v11 = vld [vmem:[#allocation5 + $0xd8] sm:$0xff] }
  0x44   :  { %2097 = vmatprep.subr.bf16.mxu1 %v2096_v30  ;;  %v436_v8 = vld [vmem:[#allocation5 + $0xe8] sm:$0xff]  ;;  %v53_v9 = vld [vmem:[%s3453_s0 + $0x10] sm:$0xff]  ;;  %v438_v12 = vld [vmem:[#allocation5 + $0xf8] sm:$0xff]  ;;  %v2993_v13 = vpack.c.bf16 %v429_v5, %v425_v4 }
  0x45   :  { %v431_v14 = vld [vmem:[#allocation5 + $0xc0] sm:$0xff]  ;;  %v2997_v16 = vpack.c.bf16 %v436_v8, %v432_v7  ;;  %v433_v17 = vld [vmem:[#allocation5 + $0xd0] sm:$0xff]  ;;  %v3000_v19 = vpack.c.bf16 %v438_v12, %v434_v11  ;;  %v440_v20 = vld [vmem:[#allocation5 + $0x108] sm:$0xff] }
  0x46   :  { %2067 = vmatpush1.bf16.msra.mxu0 %v2066_v36  ;;  %v435_v15 = vld [vmem:[#allocation5 + $0xe0] sm:$0xff]  ;;  %v437_v18 = vld [vmem:[#allocation5 + $0xf0] sm:$0xff]  ;;  %v444_v21 = vld [vmem:[#allocation5 + $0x128] sm:$0xff] }
  0x47   :  { %2099 = vmatpush1.bf16.msra.mxu1 %v2098_v37  ;;  %2101 = vmatprep.subr.bf16.mxu0 %v2951_v38  ;;  %v54_v22 = vld [vmem:[%s3453_s0 + $0x18] sm:$0xff]  ;;  %v3006_v23 = vpack.c.bf16 %v435_v15, %v431_v14  ;;  %v3010_v26 = vpack.c.bf16 %v437_v18, %v433_v17  ;;  %v439_v27 = vld [vmem:[#allocation5 + $0x100] sm:$0xff]  ;;  %v3014_v29 = vpack.c.bf16 %v444_v21, %v440_v20  ;;  %v441_v30 = vld [vmem:[#allocation5 + $0x110] sm:$0xff] }
  0x48   :  { %2133 = vmatprep.subr.bf16.mxu1 %v2953_v41  ;;  %v442_v24 = vld [vmem:[#allocation5 + $0x118] sm:$0xff]  ;;  %v443_v28 = vld [vmem:[#allocation5 + $0x120] sm:$0xff]  ;;  %v445_v31 = vld [vmem:[#allocation5 + $0x130] sm:$0xff] }
  0x49   :  { %210 = vmatmul.mubr.f32.vlgmr.msra.gmra.mrb[0].mxu0 %v51_v46  ;;  %v446_v25 = vld [vmem:[#allocation5 + $0x138] sm:$0xff]  ;;  %v448_v33 = vld [vmem:[#allocation5 + $0x148] sm:$0xff]  ;;  %v55_v35 = vld [vmem:[%s3453_s0 + $0x20] sm:$0xff]  ;;  %v3023_v36 = vpack.c.bf16 %v443_v28, %v439_v27  ;;  %v3027_v40 = vpack.c.bf16 %v445_v31, %v441_v30  ;;  %v125_v28 = vlaneseq }
  0x4a   :  { %323 = vmatmul.mubr.f32.vlgmr.msra.gmra.mrb[0].mxu1 %v51_v46  ;;  %2103 = vmatpush1.bf16.msra.mxu0 %v2958_v47  ;;  %v3017_v32 = vpack.c.bf16 %v446_v25, %v442_v24  ;;  %v452_v34 = vld [vmem:[#allocation5 + $0x168] sm:$0xff]  ;;  %v450_v37 = vld [vmem:[#allocation5 + $0x158] sm:$0xff]  ;;  %v447_v42 = vld [vmem:[#allocation5 + $0x140] sm:$0xff] }
  0x4b   :  { %2135 = vmatpush1.bf16.msra.mxu1 %v2961_v50  ;;  %215 = vmatprep.mubr.f32.mxu0 %v2887_v0  ;;  %v454_v39 = vld [vmem:[#allocation5 + $0x178] sm:$0xff]  ;;  %v451_v43 = vld [vmem:[#allocation5 + $0x160] sm:$0xff]  ;;  %v3031_v44 = vpack.c.bf16 %v452_v34, %v448_v33  ;;  %v449_v45 = vld [vmem:[#allocation5 + $0x150] sm:$0xff]  ;;  %v126_v30 = vshrl.u32 %v125_v28, 7 }
  0x4c   :  { %328 = vmatprep.mubr.f32.mxu1 %v2887_v0  ;;  %2105 = vmatprep.subr.bf16.mxu0 %v2964_v53  ;;  %v453_v46 = vld [vmem:[#allocation5 + $0x170] sm:$0xff]  ;;  %v3034_v48 = vpack.c.bf16 %v454_v39, %v450_v37  ;;  %v456_v49 = vld [vmem:[#allocation5 + $0x188] sm:$0xff]  ;;  %v3040_v54 = vpack.c.bf16 %v451_v43, %v447_v42  ;;  %v458_v55 = vld [vmem:[#allocation5 + $0x198] sm:$0xff] }
  0x4d   :  { %216 = vmatmul.mubr.f32.gmra.mrb[2].mxu0 %v52_v59  ;;  %2137 = vmatprep.subr.bf16.mxu1 %v2966_v56  ;;  %v460_v51 = vld [vmem:[#allocation5 + $0x1a8] sm:$0xff]  ;;  %v462_v57 = vld [vmem:[#allocation5 + $0x1b8] sm:$0xff]  ;;  %v3044_v58 = vpack.c.bf16 %v453_v46, %v449_v45  ;;  %v459_v61 = vld [vmem:[#allocation5 + $0x1a0] sm:$0xff]  ;;  %v127_v31 = vsub.s32 0, %v126_v30  ;;  %v131_v34 = vsub.s32 1, %v126_v30  ;;  %v139_v42 = vsub.s32 3, %v126_v30 }
  0x4e   :  { %329 = vmatmul.mubr.f32.gmra.mrb[2].mxu1 %v52_v59  ;;  %2107 = vmatpush1.bf16.msra.mxu0 %v2972_v60  ;;  %v56_v52 = vld [vmem:[%s3453_s0 + $0x28] sm:$0xff]  ;;  %v455_v59 = vld [vmem:[#allocation5 + $0x180] sm:$0xff]  ;;  %v3048_v62 = vpack.c.bf16 %v460_v51, %v456_v49  ;;  %v457_v1 = vld [vmem:[#allocation5 + $0x190] sm:$0xff]  ;;  %v3051_v4 = vpack.c.bf16 %v462_v57, %v458_v55 }
  0x4f   :  { %2139 = vmatpush1.bf16.msra.mxu1 %v2976_v63  ;;  %221 = vmatprep.mubr.f32.mxu0 %v2887_v0  ;;  %v461_v2 = vld [vmem:[#allocation5 + $0x1b0] sm:$0xff]  ;;  %v464_v5 = vld [vmem:[#allocation5 + $0x1c8] sm:$0xff]  ;;  %v466_v11 = vld [vmem:[#allocation5 + $0x1d8] sm:$0xff] }
  0x50   :  { %334 = vmatprep.mubr.f32.mxu1 %v2887_v0  ;;  %2109 = vmatprep.subr.bf16.mxu0 %v2980_v3  ;;  %v468_v7 = vld [vmem:[#allocation5 + $0x1e8] sm:$0xff]  ;;  %v57_v8 = vld [vmem:[%s3453_s0 + $0x30] sm:$0xff]  ;;  %v470_v12 = vld [vmem:[#allocation5 + $0x1f8] sm:$0xff]  ;;  %v3061_v14 = vpack.c.bf16 %v461_v2, %v457_v1 }
  0x51   :  { %222 = vmatmul.mubr.f32.gmra.mrb[4].mxu0 %v53_v9  ;;  %2141 = vmatprep.subr.bf16.mxu1 %v2983_v6  ;;  %v463_v15 = vld [vmem:[#allocation5 + $0x1c0] sm:$0xff]  ;;  %v3065_v18 = vpack.c.bf16 %v468_v7, %v464_v5  ;;  %v465_v20 = vld [vmem:[#allocation5 + $0x1d0] sm:$0xff]  ;;  %v58_v24 = vld [vmem:[%s3453_s0 + $0x38] sm:$0xff] }
  0x52   :  { %335 = vmatmul.mubr.f32.gmra.mrb[4].mxu1 %v53_v9  ;;  %2111 = vmatpush1.bf16.msra.mxu0 %v2989_v10  ;;  %v3057_v9 = vpack.c.bf16 %v459_v61, %v455_v59  ;;  %v467_v17 = vld [vmem:[#allocation5 + $0x1e0] sm:$0xff]  ;;  %v469_v21 = vld [vmem:[#allocation5 + $0x1f0] sm:$0xff]  ;;  %v135_v59 = vsub.s32 2, %v126_v30 }
  0x53   :  { %2143 = vmatpush1.bf16.msra.mxu1 %v2993_v13  ;;  %227 = vmatprep.mubr.f32.mxu0 %v2887_v0  ;;  %v3074_v25 = vpack.c.bf16 %v467_v17, %v463_v15  ;;  %v3078_v27 = vpack.c.bf16 %v469_v21, %v465_v20  ;;  %v123_v33 = vld [vmem:[%s3456_s3] sm:$0xf] }
  0x54   :  { %340 = vmatprep.mubr.f32.mxu1 %v2887_v0  ;;  %2113 = vmatprep.subr.bf16.mxu0 %v2997_v16  ;;  %v3130_v37 = vrot.slane %v123_v33, %v131_v34  ;;  %v3134_v57 = vrot.slane %v123_v33, %v139_v42  ;;  %v3137_v1 = vrot.slane %v123_v33, %v135_v59 }
  0x55   :  { %228 = vmatmul.mubr.f32.gmra.mrb[6].mxu0 %v54_v22  ;;  %2145 = vmatprep.subr.bf16.mxu1 %v3000_v19 }
  0x56   :  { %341 = vmatmul.mubr.f32.gmra.mrb[6].mxu1 %v54_v22  ;;  %2115 = vmatpush1.bf16.msra.mxu0 %v3006_v23  ;;  %v3068_v22 = vpack.c.bf16 %v470_v12, %v466_v11 }
  0x57   :  { %2147 = vmatpush1.bf16.msra.mxu1 %v3010_v26  ;;  %233 = vmatprep.mubr.f32.mxu0 %v2887_v0 }
  0x58   :  { %346 = vmatprep.mubr.f32.mxu1 %v2887_v0  ;;  %2117 = vmatprep.subr.bf16.mxu0 %v3014_v29 }
  0x59   :  { %234 = vmatmul.mubr.f32.gmra.mrb[8].mxu0 %v55_v35  ;;  %2149 = vmatprep.subr.bf16.mxu1 %v3017_v32 }
  0x5a   :  { %347 = vmatmul.mubr.f32.gmra.mrb[8].mxu1 %v55_v35  ;;  %2119 = vmatpush1.bf16.msra.mxu0 %v3023_v36  ;;  %v3128_v35 = vrot.slane %v123_v33, %v127_v31 }
  0x5b   :  { %2151 = vmatpush1.bf16.msra.mxu1 %v3027_v40  ;;  %239 = vmatprep.mubr.f32.mxu0 %v2887_v0 }
  0x5c   :  { %352 = vmatprep.mubr.f32.mxu1 %v2887_v0  ;;  %2121 = vmatprep.subr.bf16.mxu0 %v3031_v44 }
  0x5d   :  { %240 = vmatmul.mubr.f32.gmra.mrb[10].mxu0 %v56_v52  ;;  %2153 = vmatprep.subr.bf16.mxu1 %v3034_v48 }
  0x5e   :  { %353 = vmatmul.mubr.f32.gmra.mrb[10].mxu1 %v56_v52  ;;  %2123 = vmatpush1.bf16.msra.mxu0 %v3040_v54 }
  0x5f   :  { %2155 = vmatpush1.bf16.msra.mxu1 %v3044_v58  ;;  %245 = vmatprep.mubr.f32.mxu0 %v2887_v0 }
  0x60   :  { %358 = vmatprep.mubr.f32.mxu1 %v2887_v0  ;;  %2125 = vmatprep.subr.bf16.mxu0 %v3048_v62 }
  0x61   :  { %246 = vmatmul.mubr.f32.gmra.mrb[12].mxu0 %v57_v8  ;;  %2157 = vmatprep.subr.bf16.mxu1 %v3051_v4 }
  0x62   :  { %359 = vmatmul.mubr.f32.gmra.mrb[12].mxu1 %v57_v8  ;;  %2127 = vmatpush1.bf16.msra.mxu0 %v3057_v9 }
  0x63   :  { %2159 = vmatpush1.bf16.msra.mxu1 %v3061_v14  ;;  %251 = vmatprep.mubr.f32.mxu0 %v2887_v0 }
  0x64   :  { %364 = vmatprep.mubr.f32.mxu1 %v2887_v0  ;;  %2129 = vmatprep.subr.bf16.mxu0 %v3065_v18 }
  0x65   :  { %252 = vmatmul.mubr.f32.gmra.mrb[14].mxu0 %v58_v24  ;;  %2161 = vmatprep.subr.bf16.mxu1 %v3068_v22 }
  0x66   :  { %365 = vmatmul.mubr.f32.gmra.mrb[14].mxu1 %v58_v24  ;;  %2131 = vmatpush1.bf16.msra.mxu0 %v3074_v25 }
  0x67   :  { %2163 = vmatpush1.bf16.msra.mxu1 %v3078_v27  ;;  %535 = vmatprep.mubr.f32.mxu0 %v2887_v0 }
  0x68   :  { %606 = vmatprep.mubr.f32.mxu1 %v2887_v0  ;;  %2165 = vmatprep.subr.bf16.mxu0 %v2951_v38 }
  0x69   :  { %536 = vmatmul.mubr.f32.vlgmr.msra.gmra.mrb[0].mxu0 %v2887_v0  ;;  %2197 = vmatprep.subr.bf16.mxu1 %v2953_v41 }
  0x6a   :  { %607 = vmatmul.mubr.f32.vlgmr.msra.gmra.mrb[0].mxu1 %v2887_v0  ;;  %2167 = vmatpush1.bf16.msra.mxu0 %v2958_v47 }
  0x6b   :  { %2199 = vmatpush1.bf16.msra.mxu1 %v2961_v50  ;;  %2169 = vmatprep.subr.bf16.mxu0 %v2964_v53 }
  0x6c   :  { %2201 = vmatprep.subr.bf16.mxu1 %v2966_v56  ;;  %709 = vmatprep.mubr.f32.mxu0 %v2887_v0 }
  0x6d   :  { %780 = vmatprep.mubr.f32.mxu1 %v2887_v0 }
  0x6e   :  { %2171 = vmatpush1.bf16.msra.mxu0 %v2972_v60 }
  0x6f   :  { %2203 = vmatpush1.bf16.msra.mxu1 %v2976_v63  ;;  %2173 = vmatprep.subr.bf16.mxu0 %v2980_v3 }
  0x70   :  { %2205 = vmatprep.subr.bf16.mxu1 %v2983_v6 }
  0x72   :  { %2175 = vmatpush1.bf16.msra.mxu0 %v2989_v10 }
  0x73   :  { %2207 = vmatpush1.bf16.msra.mxu1 %v2993_v13  ;;  %2177 = vmatprep.subr.bf16.mxu0 %v2997_v16 }
  0x74   :  { %2209 = vmatprep.subr.bf16.mxu1 %v3000_v19 }
  0x76   :  { %2179 = vmatpush1.bf16.msra.mxu0 %v3006_v23 }
  0x77   :  { %2211 = vmatpush1.bf16.msra.mxu1 %v3010_v26  ;;  %2181 = vmatprep.subr.bf16.mxu0 %v3014_v29 }
  0x78   :  { %2213 = vmatprep.subr.bf16.mxu1 %v3017_v32 }
  0x7a   :  { %2183 = vmatpush1.bf16.msra.mxu0 %v3023_v36 }
  0x7b   :  { %2215 = vmatpush1.bf16.msra.mxu1 %v3027_v40  ;;  %2185 = vmatprep.subr.bf16.mxu0 %v3031_v44 }
  0x7c   :  { %2217 = vmatprep.subr.bf16.mxu1 %v3034_v48 }
  0x7e   :  { %2187 = vmatpush1.bf16.msra.mxu0 %v3040_v54 }
  0x7f   :  { %2219 = vmatpush1.bf16.msra.mxu1 %v3044_v58  ;;  %2189 = vmatprep.subr.bf16.mxu0 %v3048_v62 }
  0x80   :  { %2221 = vmatprep.subr.bf16.mxu1 %v3051_v4 }
  0x82   :  { %2191 = vmatpush1.bf16.msra.mxu0 %v3057_v9 }
  0x83   :  { %2223 = vmatpush1.bf16.msra.mxu1 %v3061_v14  ;;  %2193 = vmatprep.subr.bf16.mxu0 %v3065_v18 }
  0x84   :  { %2225 = vmatprep.subr.bf16.mxu1 %v3068_v22 }
  0x86   :  { %2195 = vmatpush1.bf16.msra.mxu0 %v3074_v25 }
  0x87   :  { %2227 = vmatpush1.bf16.msra.mxu1 %v3078_v27  ;;  %2229 = vmatprep.subr.bf16.mxu0 %v2951_v38 }
  0x88   :  { %2261 = vmatprep.subr.bf16.mxu1 %v2953_v41 }
 0x13c   :  { %v537_v39 = vpop.f32.mrb[0].mxu0 }
 0x13d   :  { %v2636_v43 = vadd.f32 %v537_v39, %v3128_v35  ;;  %v608_v45 = vpop.f32.mrb[0].mxu1  ;;  %v539_v46 = vpop.f32.mrb[1].mxu0 }
 0x13e   :  { %v2637_v49 = vadd.f32 %v539_v46, %v3130_v37  ;;  %v610_v51 = vpop.f32.mrb[1].mxu1  ;;  %v2652_v5 = vadd.f32 %v608_v45, %v3137_v1 }
 0x13f   :  { %v1959_v52 = vmul.f32 -1.442695, %v2636_v43  ;;  %v2653_v61 = vadd.f32 %v610_v51, %v3134_v57 }
 0x140   :  { %v1960_v55 = vmul.f32 -1.442695, %v2637_v49 }
 0x141   :  { %2707 = vpow2.f32 %v1959_v52  ;;  %v1961_v2 = vmul.f32 -1.442695, %v2653_v61 }
 0x142   :  { %2709 = vpow2.f32 %v1960_v55 }
 0x143   :  { %2711 = vpow2.f32 %v1961_v2 }
 0x144   :  { %2713 = vtanh.f32 %v2652_v5 }
 0x14b   :  { %v2708_v7 = vpop.eup %2707 }
 0x14c   :  { %v2710_v8 = vpop.eup %2709  ;;  %v620_v11 = vadd.f32 1.0, %v2708_v7 }
 0x14d   :  { %v626_v12 = vadd.f32 1.0, %v2710_v8  ;;  %v2712_v15 = vpop.eup %2711 }
 0x14e   :  { %2715 = vrcp.f32 %v620_v11  ;;  %v2714_v17 = vpop.eup %2713  ;;  %v633_v28 = vadd.f32 1.0, %v2712_v15 }
 0x14f   :  { %2717 = vrcp.f32 %v626_v12 }
 0x150   :  { %2719 = vrcp.f32 %v633_v28 }
 0x158   :  { %v2716_v20 = vpop.eup %2715 }
 0x159   :  { %v2718_v21 = vpop.eup %2717  ;;  %v637_v24 = vmul.f32 %v2716_v20, %v2714_v17 }
 0x15a   :  { %v636_v30 = vmul.f32 0.0, %v2718_v21  ;;  %v2720_v33 = vpop.eup %2719 }
 0x15c   :  { %v3140_v31 = vadd.f32 %v637_v24, %v636_v30 }
 0x15e   :  { %2721 = vtanh.f32 %v3140_v31 }
 0x168   :  { %v2722_v34 = vpop.eup %2721 }
 0x169   :  { %v640_v39 = vmul.f32 %v2722_v34, %v2720_v33 }
 0x16b   :  { %710 = vmatmul.mubr.f32.vlgmr.msra.gmra.mrb[2].mxu0 %v640_v39  ;;  %781 = vmatmul.mubr.f32.vlgmr.msra.gmra.mrb[2].mxu1 %v640_v39 }
 0x16c   :  { %2231 = vmatpush1.bf16.msra.mxu0 %v2958_v47  ;;  %2263 = vmatpush1.bf16.msra.mxu1 %v2961_v50 }
 0x16d   :  { %2233 = vmatprep.subr.bf16.mxu0 %v2964_v53  ;;  %2265 = vmatprep.subr.bf16.mxu1 %v2966_v56 }
 0x16e   :  { %883 = vmatprep.mubr.f32.mxu0 %v2887_v0  ;;  %954 = vmatprep.mubr.f32.mxu1 %v2887_v0 }
 0x170   :  { %2235 = vmatpush1.bf16.msra.mxu0 %v2972_v60  ;;  %2267 = vmatpush1.bf16.msra.mxu1 %v2976_v63 }
 0x171   :  { %2237 = vmatprep.subr.bf16.mxu0 %v2980_v3  ;;  %2269 = vmatprep.subr.bf16.mxu1 %v2983_v6 }
 0x174   :  { %2239 = vmatpush1.bf16.msra.mxu0 %v2989_v10  ;;  %2271 = vmatpush1.bf16.msra.mxu1 %v2993_v13 }
 0x175   :  { %2241 = vmatprep.subr.bf16.mxu0 %v2997_v16  ;;  %2273 = vmatprep.subr.bf16.mxu1 %v3000_v19 }
 0x178   :  { %2243 = vmatpush1.bf16.msra.mxu0 %v3006_v23  ;;  %2275 = vmatpush1.bf16.msra.mxu1 %v3010_v26 }
 0x179   :  { %2245 = vmatprep.subr.bf16.mxu0 %v3014_v29  ;;  %2277 = vmatprep.subr.bf16.mxu1 %v3017_v32 }
 0x17c   :  { %2247 = vmatpush1.bf16.msra.mxu0 %v3023_v36  ;;  %2279 = vmatpush1.bf16.msra.mxu1 %v3027_v40 }
 0x17d   :  { %2249 = vmatprep.subr.bf16.mxu0 %v3031_v44  ;;  %2281 = vmatprep.subr.bf16.mxu1 %v3034_v48 }
 0x180   :  { %2251 = vmatpush1.bf16.msra.mxu0 %v3040_v54  ;;  %2283 = vmatpush1.bf16.msra.mxu1 %v3044_v58 }
 0x181   :  { %2253 = vmatprep.subr.bf16.mxu0 %v3048_v62  ;;  %2285 = vmatprep.subr.bf16.mxu1 %v3051_v4 }
 0x184   :  { %2255 = vmatpush1.bf16.msra.mxu0 %v3057_v9  ;;  %2287 = vmatpush1.bf16.msra.mxu1 %v3061_v14 }
 0x185   :  { %2257 = vmatprep.subr.bf16.mxu0 %v3065_v18  ;;  %2289 = vmatprep.subr.bf16.mxu1 %v3068_v22 }
 0x188   :  { %2259 = vmatpush1.bf16.msra.mxu0 %v3074_v25  ;;  %2291 = vmatpush1.bf16.msra.mxu1 %v3078_v27 }
 0x189   :  { %2293 = vmatprep.subr.bf16.mxu0 %v2951_v38  ;;  %2325 = vmatprep.subr.bf16.mxu1 %v2953_v41 }
 0x23e   :  { %v711_v42 = vpop.f32.mrb[2].mxu0  ;;  %v782_v43 = vpop.f32.mrb[2].mxu1 }
 0x23f   :  { %v2638_v45 = vadd.f32 %v711_v42, %v3128_v35  ;;  %v713_v46 = vpop.f32.mrb[3].mxu0  ;;  %v784_v49 = vpop.f32.mrb[3].mxu1  ;;  %v2654_v2 = vadd.f32 %v782_v43, %v3137_v1 }
 0x240   :  { %v2639_v51 = vadd.f32 %v713_v46, %v3130_v37  ;;  %v2655_v59 = vadd.f32 %v784_v49, %v3134_v57 }
 0x241   :  { %v1962_v52 = vmul.f32 -1.442695, %v2638_v45 }
 0x242   :  { %v1963_v55 = vmul.f32 -1.442695, %v2639_v51  ;;  %v1964_v61 = vmul.f32 -1.442695, %v2655_v59 }
 0x243   :  { %2723 = vpow2.f32 %v1962_v52 }
 0x244   :  { %2725 = vpow2.f32 %v1963_v55 }
 0x245   :  { %2727 = vpow2.f32 %v1964_v61 }
 0x246   :  { %2729 = vtanh.f32 %v2654_v2 }
 0x24d   :  { %v2724_v5 = vpop.eup %2723 }
 0x24e   :  { %v2726_v7 = vpop.eup %2725  ;;  %v794_v8 = vadd.f32 1.0, %v2724_v5 }
 0x24f   :  { %v800_v11 = vadd.f32 1.0, %v2726_v7  ;;  %v2728_v12 = vpop.eup %2727 }
 0x250   :  { %2731 = vrcp.f32 %v794_v8  ;;  %v2730_v15 = vpop.eup %2729  ;;  %v807_v24 = vadd.f32 1.0, %v2728_v12 }
 0x251   :  { %2733 = vrcp.f32 %v800_v11 }
 0x252   :  { %2735 = vrcp.f32 %v807_v24 }
 0x25a   :  { %v2732_v17 = vpop.eup %2731 }
 0x25b   :  { %v2734_v20 = vpop.eup %2733  ;;  %v811_v21 = vmul.f32 %v2732_v17, %v2730_v15 }
 0x25c   :  { %v810_v28 = vmul.f32 %v2734_v20, %v3140_v31  ;;  %v2736_v33 = vpop.eup %2735 }
 0x25e   :  { %v3182_v30 = vadd.f32 %v811_v21, %v810_v28 }
 0x260   :  { %2737 = vtanh.f32 %v3182_v30 }
 0x26a   :  { %v2738_v34 = vpop.eup %2737 }
 0x26b   :  { %v814_v39 = vmul.f32 %v2738_v34, %v2736_v33 }
 0x26d   :  { %884 = vmatmul.mubr.f32.vlgmr.msra.gmra.mrb[4].mxu0 %v814_v39  ;;  %955 = vmatmul.mubr.f32.vlgmr.msra.gmra.mrb[4].mxu1 %v814_v39 }
 0x26e   :  { %2295 = vmatpush1.bf16.msra.mxu0 %v2958_v47  ;;  %2327 = vmatpush1.bf16.msra.mxu1 %v2961_v50 }
 0x26f   :  { %2297 = vmatprep.subr.bf16.mxu0 %v2964_v53  ;;  %2329 = vmatprep.subr.bf16.mxu1 %v2966_v56 }
 0x270   :  { %1057 = vmatprep.mubr.f32.mxu0 %v2887_v0  ;;  %1128 = vmatprep.mubr.f32.mxu1 %v2887_v0 }
 0x272   :  { %2299 = vmatpush1.bf16.msra.mxu0 %v2972_v60  ;;  %2331 = vmatpush1.bf16.msra.mxu1 %v2976_v63 }
 0x273   :  { %2301 = vmatprep.subr.bf16.mxu0 %v2980_v3  ;;  %2333 = vmatprep.subr.bf16.mxu1 %v2983_v6 }
 0x276   :  { %2303 = vmatpush1.bf16.msra.mxu0 %v2989_v10  ;;  %2335 = vmatpush1.bf16.msra.mxu1 %v2993_v13 }
 0x277   :  { %2305 = vmatprep.subr.bf16.mxu0 %v2997_v16  ;;  %2337 = vmatprep.subr.bf16.mxu1 %v3000_v19 }
 0x27a   :  { %2307 = vmatpush1.bf16.msra.mxu0 %v3006_v23  ;;  %2339 = vmatpush1.bf16.msra.mxu1 %v3010_v26 }
 0x27b   :  { %2309 = vmatprep.subr.bf16.mxu0 %v3014_v29  ;;  %2341 = vmatprep.subr.bf16.mxu1 %v3017_v32 }
 0x27e   :  { %2311 = vmatpush1.bf16.msra.mxu0 %v3023_v36  ;;  %2343 = vmatpush1.bf16.msra.mxu1 %v3027_v40 }
 0x27f   :  { %2313 = vmatprep.subr.bf16.mxu0 %v3031_v44  ;;  %2345 = vmatprep.subr.bf16.mxu1 %v3034_v48 }
 0x282   :  { %2315 = vmatpush1.bf16.msra.mxu0 %v3040_v54  ;;  %2347 = vmatpush1.bf16.msra.mxu1 %v3044_v58 }
 0x283   :  { %2317 = vmatprep.subr.bf16.mxu0 %v3048_v62  ;;  %2349 = vmatprep.subr.bf16.mxu1 %v3051_v4 }
 0x286   :  { %2319 = vmatpush1.bf16.msra.mxu0 %v3057_v9  ;;  %2351 = vmatpush1.bf16.msra.mxu1 %v3061_v14 }
 0x287   :  { %2321 = vmatprep.subr.bf16.mxu0 %v3065_v18  ;;  %2353 = vmatprep.subr.bf16.mxu1 %v3068_v22 }
 0x28a   :  { %2323 = vmatpush1.bf16.msra.mxu0 %v3074_v25  ;;  %2355 = vmatpush1.bf16.msra.mxu1 %v3078_v27 }
 0x28b   :  { %2357 = vmatprep.subr.bf16.mxu0 %v2951_v38  ;;  %2389 = vmatprep.subr.bf16.mxu1 %v2953_v41 }
 0x340   :  { %v885_v31 = vpop.f32.mrb[4].mxu0  ;;  %v956_v42 = vpop.f32.mrb[4].mxu1 }
 0x341   :  { %v2640_v43 = vadd.f32 %v885_v31, %v3128_v35  ;;  %v887_v45 = vpop.f32.mrb[5].mxu0  ;;  %v958_v46 = vpop.f32.mrb[5].mxu1  ;;  %v2656_v61 = vadd.f32 %v956_v42, %v3137_v1 }
 0x342   :  { %v2641_v49 = vadd.f32 %v887_v45, %v3130_v37  ;;  %v2657_v55 = vadd.f32 %v958_v46, %v3134_v57 }
 0x343   :  { %v1965_v51 = vmul.f32 -1.442695, %v2640_v43 }
 0x344   :  { %v1966_v52 = vmul.f32 -1.442695, %v2641_v49  ;;  %v1967_v59 = vmul.f32 -1.442695, %v2657_v55 }
 0x345   :  { %2739 = vpow2.f32 %v1965_v51 }
 0x346   :  { %2741 = vpow2.f32 %v1966_v52 }
 0x347   :  { %2743 = vpow2.f32 %v1967_v59 }
 0x348   :  { %2745 = vtanh.f32 %v2656_v61 }
 0x34f   :  { %v2740_v2 = vpop.eup %2739 }
 0x350   :  { %v2742_v5 = vpop.eup %2741  ;;  %v968_v7 = vadd.f32 1.0, %v2740_v2 }
 0x351   :  { %v974_v8 = vadd.f32 1.0, %v2742_v5  ;;  %v2744_v11 = vpop.eup %2743 }
 0x352   :  { %2747 = vrcp.f32 %v968_v7  ;;  %v2746_v12 = vpop.eup %2745  ;;  %v981_v21 = vadd.f32 1.0, %v2744_v11 }
 0x353   :  { %2749 = vrcp.f32 %v974_v8 }
 0x354   :  { %2751 = vrcp.f32 %v981_v21 }
 0x35c   :  { %v2748_v15 = vpop.eup %2747 }
 0x35d   :  { %v2750_v17 = vpop.eup %2749  ;;  %v985_v20 = vmul.f32 %v2748_v15, %v2746_v12 }
 0x35e   :  { %v984_v24 = vmul.f32 %v2750_v17, %v3182_v30  ;;  %v2752_v33 = vpop.eup %2751 }
 0x360   :  { %v3224_v28 = vadd.f32 %v985_v20, %v984_v24 }
 0x362   :  { %2753 = vtanh.f32 %v3224_v28 }
 0x36c   :  { %v2754_v34 = vpop.eup %2753 }
 0x36d   :  { %v988_v39 = vmul.f32 %v2754_v34, %v2752_v33 }
 0x36f   :  { %1058 = vmatmul.mubr.f32.vlgmr.msra.gmra.mrb[6].mxu0 %v988_v39  ;;  %1129 = vmatmul.mubr.f32.vlgmr.msra.gmra.mrb[6].mxu1 %v988_v39 }
 0x370   :  { %2359 = vmatpush1.bf16.msra.mxu0 %v2958_v47  ;;  %2391 = vmatpush1.bf16.msra.mxu1 %v2961_v50 }
 0x371   :  { %2361 = vmatprep.subr.bf16.mxu0 %v2964_v53  ;;  %2393 = vmatprep.subr.bf16.mxu1 %v2966_v56 }
 0x372   :  { %1231 = vmatprep.mubr.f32.mxu0 %v2887_v0  ;;  %1302 = vmatprep.mubr.f32.mxu1 %v2887_v0 }
 0x374   :  { %2363 = vmatpush1.bf16.msra.mxu0 %v2972_v60  ;;  %2395 = vmatpush1.bf16.msra.mxu1 %v2976_v63 }
 0x375   :  { %2365 = vmatprep.subr.bf16.mxu0 %v2980_v3  ;;  %2397 = vmatprep.subr.bf16.mxu1 %v2983_v6 }
 0x378   :  { %2367 = vmatpush1.bf16.msra.mxu0 %v2989_v10  ;;  %2399 = vmatpush1.bf16.msra.mxu1 %v2993_v13 }
 0x379   :  { %2369 = vmatprep.subr.bf16.mxu0 %v2997_v16  ;;  %2401 = vmatprep.subr.bf16.mxu1 %v3000_v19 }
 0x37c   :  { %2371 = vmatpush1.bf16.msra.mxu0 %v3006_v23  ;;  %2403 = vmatpush1.bf16.msra.mxu1 %v3010_v26 }
 0x37d   :  { %2373 = vmatprep.subr.bf16.mxu0 %v3014_v29  ;;  %2405 = vmatprep.subr.bf16.mxu1 %v3017_v32 }
 0x380   :  { %2375 = vmatpush1.bf16.msra.mxu0 %v3023_v36  ;;  %2407 = vmatpush1.bf16.msra.mxu1 %v3027_v40 }
 0x381   :  { %2377 = vmatprep.subr.bf16.mxu0 %v3031_v44  ;;  %2409 = vmatprep.subr.bf16.mxu1 %v3034_v48 }
 0x384   :  { %2379 = vmatpush1.bf16.msra.mxu0 %v3040_v54  ;;  %2411 = vmatpush1.bf16.msra.mxu1 %v3044_v58 }
 0x385   :  { %2381 = vmatprep.subr.bf16.mxu0 %v3048_v62  ;;  %2413 = vmatprep.subr.bf16.mxu1 %v3051_v4 }
 0x388   :  { %2383 = vmatpush1.bf16.msra.mxu0 %v3057_v9  ;;  %2415 = vmatpush1.bf16.msra.mxu1 %v3061_v14 }
 0x389   :  { %2385 = vmatprep.subr.bf16.mxu0 %v3065_v18  ;;  %2417 = vmatprep.subr.bf16.mxu1 %v3068_v22 }
 0x38c   :  { %2387 = vmatpush1.bf16.msra.mxu0 %v3074_v25  ;;  %2419 = vmatpush1.bf16.msra.mxu1 %v3078_v27 }
 0x38d   :  { %2421 = vmatprep.subr.bf16.mxu0 %v2951_v38  ;;  %2453 = vmatprep.subr.bf16.mxu1 %v2953_v41 }
 0x442   :  { %v1059_v30 = vpop.f32.mrb[6].mxu0  ;;  %v1130_v31 = vpop.f32.mrb[6].mxu1 }
 0x443   :  { %v2642_v42 = vadd.f32 %v1059_v30, %v3128_v35  ;;  %v1061_v43 = vpop.f32.mrb[7].mxu0  ;;  %v1132_v45 = vpop.f32.mrb[7].mxu1  ;;  %v2658_v59 = vadd.f32 %v1130_v31, %v3137_v1 }
 0x444   :  { %v2643_v46 = vadd.f32 %v1061_v43, %v3130_v37  ;;  %v2659_v52 = vadd.f32 %v1132_v45, %v3134_v57 }
 0x445   :  { %v1968_v49 = vmul.f32 -1.442695, %v2642_v42 }
 0x446   :  { %v1969_v51 = vmul.f32 -1.442695, %v2643_v46  ;;  %v1970_v55 = vmul.f32 -1.442695, %v2659_v52 }
 0x447   :  { %2755 = vpow2.f32 %v1968_v49 }
 0x448   :  { %2757 = vpow2.f32 %v1969_v51 }
 0x449   :  { %2759 = vpow2.f32 %v1970_v55 }
 0x44a   :  { %2761 = vtanh.f32 %v2658_v59 }
 0x451   :  { %v2756_v61 = vpop.eup %2755 }
 0x452   :  { %v2758_v2 = vpop.eup %2757  ;;  %v1142_v5 = vadd.f32 1.0, %v2756_v61 }
 0x453   :  { %v1148_v7 = vadd.f32 1.0, %v2758_v2  ;;  %v2760_v8 = vpop.eup %2759 }
 0x454   :  { %2763 = vrcp.f32 %v1142_v5  ;;  %v2762_v11 = vpop.eup %2761  ;;  %v1155_v20 = vadd.f32 1.0, %v2760_v8 }
 0x455   :  { %2765 = vrcp.f32 %v1148_v7 }
 0x456   :  { %2767 = vrcp.f32 %v1155_v20 }
 0x45e   :  { %v2764_v12 = vpop.eup %2763 }
 0x45f   :  { %v2766_v15 = vpop.eup %2765  ;;  %v1159_v17 = vmul.f32 %v2764_v12, %v2762_v11 }
 0x460   :  { %v1158_v21 = vmul.f32 %v2766_v15, %v3224_v28  ;;  %v2768_v33 = vpop.eup %2767 }
 0x462   :  { %v3266_v24 = vadd.f32 %v1159_v17, %v1158_v21 }
 0x464   :  { %2769 = vtanh.f32 %v3266_v24 }
 0x46e   :  { %v2770_v34 = vpop.eup %2769 }
 0x46f   :  { %v1162_v39 = vmul.f32 %v2770_v34, %v2768_v33 }
 0x471   :  { %1232 = vmatmul.mubr.f32.vlgmr.msra.gmra.mrb[8].mxu0 %v1162_v39  ;;  %1303 = vmatmul.mubr.f32.vlgmr.msra.gmra.mrb[8].mxu1 %v1162_v39 }
 0x472   :  { %2423 = vmatpush1.bf16.msra.mxu0 %v2958_v47  ;;  %2455 = vmatpush1.bf16.msra.mxu1 %v2961_v50 }
 0x473   :  { %2425 = vmatprep.subr.bf16.mxu0 %v2964_v53  ;;  %2457 = vmatprep.subr.bf16.mxu1 %v2966_v56 }
 0x474   :  { %1405 = vmatprep.mubr.f32.mxu0 %v2887_v0  ;;  %1476 = vmatprep.mubr.f32.mxu1 %v2887_v0 }
 0x476   :  { %2427 = vmatpush1.bf16.msra.mxu0 %v2972_v60  ;;  %2459 = vmatpush1.bf16.msra.mxu1 %v2976_v63 }
 0x477   :  { %2429 = vmatprep.subr.bf16.mxu0 %v2980_v3  ;;  %2461 = vmatprep.subr.bf16.mxu1 %v2983_v6 }
 0x47a   :  { %2431 = vmatpush1.bf16.msra.mxu0 %v2989_v10  ;;  %2463 = vmatpush1.bf16.msra.mxu1 %v2993_v13 }
 0x47b   :  { %2433 = vmatprep.subr.bf16.mxu0 %v2997_v16  ;;  %2465 = vmatprep.subr.bf16.mxu1 %v3000_v19 }
 0x47e   :  { %2435 = vmatpush1.bf16.msra.mxu0 %v3006_v23  ;;  %2467 = vmatpush1.bf16.msra.mxu1 %v3010_v26 }
 0x47f   :  { %2437 = vmatprep.subr.bf16.mxu0 %v3014_v29  ;;  %2469 = vmatprep.subr.bf16.mxu1 %v3017_v32 }
 0x482   :  { %2439 = vmatpush1.bf16.msra.mxu0 %v3023_v36  ;;  %2471 = vmatpush1.bf16.msra.mxu1 %v3027_v40 }
 0x483   :  { %2441 = vmatprep.subr.bf16.mxu0 %v3031_v44  ;;  %2473 = vmatprep.subr.bf16.mxu1 %v3034_v48 }
 0x486   :  { %2443 = vmatpush1.bf16.msra.mxu0 %v3040_v54  ;;  %2475 = vmatpush1.bf16.msra.mxu1 %v3044_v58 }
 0x487   :  { %2445 = vmatprep.subr.bf16.mxu0 %v3048_v62  ;;  %2477 = vmatprep.subr.bf16.mxu1 %v3051_v4 }
 0x48a   :  { %2447 = vmatpush1.bf16.msra.mxu0 %v3057_v9  ;;  %2479 = vmatpush1.bf16.msra.mxu1 %v3061_v14 }
 0x48b   :  { %2449 = vmatprep.subr.bf16.mxu0 %v3065_v18  ;;  %2481 = vmatprep.subr.bf16.mxu1 %v3068_v22 }
 0x48e   :  { %2451 = vmatpush1.bf16.msra.mxu0 %v3074_v25  ;;  %2483 = vmatpush1.bf16.msra.mxu1 %v3078_v27 }
 0x48f   :  { %2485 = vmatprep.subr.bf16.mxu0 %v2951_v38  ;;  %2517 = vmatprep.subr.bf16.mxu1 %v2953_v41 }
 0x544   :  { %v1233_v28 = vpop.f32.mrb[8].mxu0  ;;  %v1304_v30 = vpop.f32.mrb[8].mxu1 }
 0x545   :  { %v2644_v31 = vadd.f32 %v1233_v28, %v3128_v35  ;;  %v1235_v42 = vpop.f32.mrb[9].mxu0  ;;  %v1306_v43 = vpop.f32.mrb[9].mxu1  ;;  %v2660_v55 = vadd.f32 %v1304_v30, %v3137_v1 }
 0x546   :  { %v2645_v45 = vadd.f32 %v1235_v42, %v3130_v37  ;;  %v2661_v51 = vadd.f32 %v1306_v43, %v3134_v57 }
 0x547   :  { %v1971_v46 = vmul.f32 -1.442695, %v2644_v31 }
 0x548   :  { %v1972_v49 = vmul.f32 -1.442695, %v2645_v45  ;;  %v1973_v52 = vmul.f32 -1.442695, %v2661_v51 }
 0x549   :  { %2771 = vpow2.f32 %v1971_v46 }
 0x54a   :  { %2773 = vpow2.f32 %v1972_v49 }
 0x54b   :  { %2775 = vpow2.f32 %v1973_v52 }
 0x54c   :  { %2777 = vtanh.f32 %v2660_v55 }
 0x553   :  { %v2772_v59 = vpop.eup %2771 }
 0x554   :  { %v2774_v61 = vpop.eup %2773  ;;  %v1316_v2 = vadd.f32 1.0, %v2772_v59 }
 0x555   :  { %v1322_v5 = vadd.f32 1.0, %v2774_v61  ;;  %v2776_v7 = vpop.eup %2775 }
 0x556   :  { %2779 = vrcp.f32 %v1316_v2  ;;  %v2778_v8 = vpop.eup %2777  ;;  %v1329_v17 = vadd.f32 1.0, %v2776_v7 }
 0x557   :  { %2781 = vrcp.f32 %v1322_v5 }
 0x558   :  { %2783 = vrcp.f32 %v1329_v17 }
 0x560   :  { %v2780_v11 = vpop.eup %2779 }
 0x561   :  { %v2782_v12 = vpop.eup %2781  ;;  %v1333_v15 = vmul.f32 %v2780_v11, %v2778_v8 }
 0x562   :  { %v1332_v20 = vmul.f32 %v2782_v12, %v3266_v24  ;;  %v2784_v33 = vpop.eup %2783 }
 0x564   :  { %v3308_v21 = vadd.f32 %v1333_v15, %v1332_v20 }
 0x566   :  { %2785 = vtanh.f32 %v3308_v21 }
 0x570   :  { %v2786_v34 = vpop.eup %2785 }
 0x571   :  { %v1336_v39 = vmul.f32 %v2786_v34, %v2784_v33  ;;  %v1862_v34 = vld [vmem:[%s3457_s4 + $0x18] sm:$0xff] }
 0x573   :  { %1406 = vmatmul.mubr.f32.vlgmr.msra.gmra.mrb[10].mxu0 %v1336_v39  ;;  %1477 = vmatmul.mubr.f32.vlgmr.msra.gmra.mrb[10].mxu1 %v1336_v39 }
 0x574   :  { %2487 = vmatpush1.bf16.msra.mxu0 %v2958_v47  ;;  %2519 = vmatpush1.bf16.msra.mxu1 %v2961_v50 }
 0x575   :  { %2489 = vmatprep.subr.bf16.mxu0 %v2964_v53  ;;  %2521 = vmatprep.subr.bf16.mxu1 %v2966_v56 }
 0x576   :  { %1579 = vmatprep.mubr.f32.mxu0 %v2887_v0  ;;  %1650 = vmatprep.mubr.f32.mxu1 %v2887_v0 }
 0x578   :  { %2491 = vmatpush1.bf16.msra.mxu0 %v2972_v60  ;;  %2523 = vmatpush1.bf16.msra.mxu1 %v2976_v63 }
 0x579   :  { %2493 = vmatprep.subr.bf16.mxu0 %v2980_v3  ;;  %2525 = vmatprep.subr.bf16.mxu1 %v2983_v6 }
 0x57c   :  { %2495 = vmatpush1.bf16.msra.mxu0 %v2989_v10  ;;  %2527 = vmatpush1.bf16.msra.mxu1 %v2993_v13 }
 0x57d   :  { %2497 = vmatprep.subr.bf16.mxu0 %v2997_v16  ;;  %2529 = vmatprep.subr.bf16.mxu1 %v3000_v19 }
 0x580   :  { %2499 = vmatpush1.bf16.msra.mxu0 %v3006_v23  ;;  %2531 = vmatpush1.bf16.msra.mxu1 %v3010_v26 }
 0x581   :  { %2501 = vmatprep.subr.bf16.mxu0 %v3014_v29  ;;  %2533 = vmatprep.subr.bf16.mxu1 %v3017_v32 }
 0x584   :  { %2503 = vmatpush1.bf16.msra.mxu0 %v3023_v36  ;;  %2535 = vmatpush1.bf16.msra.mxu1 %v3027_v40 }
 0x585   :  { %2505 = vmatprep.subr.bf16.mxu0 %v3031_v44  ;;  %2537 = vmatprep.subr.bf16.mxu1 %v3034_v48 }
 0x588   :  { %2507 = vmatpush1.bf16.msra.mxu0 %v3040_v54  ;;  %2539 = vmatpush1.bf16.msra.mxu1 %v3044_v58 }
 0x589   :  { %2509 = vmatprep.subr.bf16.mxu0 %v3048_v62  ;;  %2541 = vmatprep.subr.bf16.mxu1 %v3051_v4 }
 0x58c   :  { %2511 = vmatpush1.bf16.msra.mxu0 %v3057_v9  ;;  %2543 = vmatpush1.bf16.msra.mxu1 %v3061_v14 }
 0x58d   :  { %2513 = vmatprep.subr.bf16.mxu0 %v3065_v18  ;;  %2545 = vmatprep.subr.bf16.mxu1 %v3068_v22 }
 0x590   :  { %2515 = vmatpush1.bf16.msra.mxu0 %v3074_v25  ;;  %2547 = vmatpush1.bf16.msra.mxu1 %v3078_v27 }
 0x591   :  { %2549 = vmatprep.subr.bf16.mxu0 %v2951_v38  ;;  %2581 = vmatprep.subr.bf16.mxu1 %v2953_v41 }
 0x646   :  { %v1407_v24 = vpop.f32.mrb[10].mxu0  ;;  %v1478_v28 = vpop.f32.mrb[10].mxu1 }
 0x647   :  { %v2646_v30 = vadd.f32 %v1407_v24, %v3128_v35  ;;  %v1409_v31 = vpop.f32.mrb[11].mxu0  ;;  %v1480_v42 = vpop.f32.mrb[11].mxu1  ;;  %v2662_v52 = vadd.f32 %v1478_v28, %v3137_v1  ;;  %v1863_v24 = vld [vmem:[%s3457_s4 + $0x20] sm:$0xff]  ;;  %v1864_v28 = vld [vmem:[%s3457_s4 + $0x28] sm:$0xff] }
 0x648   :  { %v2647_v43 = vadd.f32 %v1409_v31, %v3130_v37  ;;  %v2663_v49 = vadd.f32 %v1480_v42, %v3134_v57  ;;  %v1865_v31 = vld [vmem:[%s3457_s4 + $0x30] sm:$0xff]  ;;  %v1866_v42 = vld [vmem:[%s3457_s4 + $0x38] sm:$0xff] }
 0x649   :  { %v1974_v45 = vmul.f32 -1.442695, %v2646_v30  ;;  %v2619_v30 = vpack.c.bf16 %v1864_v28, %v1863_v24 }
 0x64a   :  { %v1975_v46 = vmul.f32 -1.442695, %v2647_v43  ;;  %v1976_v51 = vmul.f32 -1.442695, %v2663_v49  ;;  %v2622_v43 = vpack.c.bf16 %v1866_v42, %v1865_v31 }
 0x64b   :  { %2787 = vpow2.f32 %v1974_v45  ;;  %v1867_v45 = vld [vmem:[%s3457_s4 + $0x40] sm:$0xff] }
 0x64c   :  { %2789 = vpow2.f32 %v1975_v46  ;;  %v1868_v46 = vld [vmem:[%s3457_s4 + $0x48] sm:$0xff] }
 0x64d   :  { %2791 = vpow2.f32 %v1976_v51  ;;  %v2625_v49 = vpack.c.bf16 %v1868_v46, %v1867_v45  ;;  %v1869_v51 = vld [vmem:[%s3457_s4 + $0x50] sm:$0xff] }
 0x64e   :  { %2793 = vtanh.f32 %v2662_v52  ;;  %v1870_v52 = vld [vmem:[%s3457_s4 + $0x58] sm:$0xff] }
 0x655   :  { %v2788_v38 = vpop.eup %2787 }
 0x656   :  { %v2790_v55 = vpop.eup %2789  ;;  %v1490_v41 = vadd.f32 1.0, %v2788_v38  ;;  %v1871_v38 = vld [vmem:[%s3457_s4 + $0x60] sm:$0xff] }
 0x657   :  { %v1496_v59 = vadd.f32 1.0, %v2790_v55  ;;  %v2792_v61 = vpop.eup %2791  ;;  %v2628_v55 = vpack.c.bf16 %v1870_v52, %v1869_v51 }
 0x658   :  { %2795 = vrcp.f32 %v1490_v41  ;;  %v2794_v2 = vpop.eup %2793  ;;  %v1503_v11 = vadd.f32 1.0, %v2792_v61  ;;  %v1872_v41 = vld [vmem:[%s3457_s4 + $0x68] sm:$0xff]  ;;  %v1873_v61 = vld [vmem:[%s3457_s4 + $0x70] sm:$0xff] }
 0x659   :  { %2797 = vrcp.f32 %v1496_v59  ;;  %v2631_v59 = vpack.c.bf16 %v1872_v41, %v1871_v38 }
 0x65a   :  { %2799 = vrcp.f32 %v1503_v11 }
 0x662   :  { %v2796_v5 = vpop.eup %2795 }
 0x663   :  { %v2798_v7 = vpop.eup %2797  ;;  %v1507_v8 = vmul.f32 %v2796_v5, %v2794_v2  ;;  %v1874_v2 = vld [vmem:[%s3457_s4 + $0x78] sm:$0xff] }
 0x664   :  { %v1506_v12 = vmul.f32 %v2798_v7, %v3308_v21  ;;  %v2800_v17 = vpop.eup %2799  ;;  %v1861_v21 = vld [vmem:[%s3457_s4 + $0x10] sm:$0xff]  ;;  %v2634_v5 = vpack.c.bf16 %v1874_v2, %v1873_v61 }
 0x665   :  { %v2616_v39 = vpack.c.bf16 %v1862_v34, %v1861_v21 }
 0x666   :  { %v3350_v15 = vadd.f32 %v1507_v8, %v1506_v12 }
 0x668   :  { %2801 = vtanh.f32 %v3350_v15 }
 0x672   :  { %v2802_v20 = vpop.eup %2801 }
 0x673   :  { %v1510_v33 = vmul.f32 %v2802_v20, %v2800_v17 }
 0x675   :  { %1580 = vmatmul.mubr.f32.vlgmr.msra.gmra.mrb[12].mxu0 %v1510_v33  ;;  %1651 = vmatmul.mubr.f32.vlgmr.msra.gmra.mrb[12].mxu1 %v1510_v33 }
 0x676   :  { %2551 = vmatpush1.bf16.msra.mxu0 %v2958_v47  ;;  %2583 = vmatpush1.bf16.msra.mxu1 %v2961_v50 }
 0x677   :  { %2553 = vmatprep.subr.bf16.mxu0 %v2964_v53  ;;  %2585 = vmatprep.subr.bf16.mxu1 %v2966_v56 }
 0x678   :  { %1753 = vmatprep.mubr.f32.mxu0 %v2887_v0  ;;  %1824 = vmatprep.mubr.f32.mxu1 %v2887_v0 }
 0x67a   :  { %2555 = vmatpush1.bf16.msra.mxu0 %v2972_v60  ;;  %2587 = vmatpush1.bf16.msra.mxu1 %v2976_v63 }
 0x67b   :  { %2557 = vmatprep.subr.bf16.mxu0 %v2980_v3  ;;  %2589 = vmatprep.subr.bf16.mxu1 %v2983_v6 }
 0x67e   :  { %2559 = vmatpush1.bf16.msra.mxu0 %v2989_v10  ;;  %2591 = vmatpush1.bf16.msra.mxu1 %v2993_v13 }
 0x67f   :  { %2561 = vmatprep.subr.bf16.mxu0 %v2997_v16  ;;  %2593 = vmatprep.subr.bf16.mxu1 %v3000_v19 }
 0x682   :  { %2563 = vmatpush1.bf16.msra.mxu0 %v3006_v23  ;;  %2595 = vmatpush1.bf16.msra.mxu1 %v3010_v26 }
 0x683   :  { %2565 = vmatprep.subr.bf16.mxu0 %v3014_v29  ;;  %2597 = vmatprep.subr.bf16.mxu1 %v3017_v32 }
 0x686   :  { %2567 = vmatpush1.bf16.msra.mxu0 %v3023_v36  ;;  %2599 = vmatpush1.bf16.msra.mxu1 %v3027_v40 }
 0x687   :  { %2569 = vmatprep.subr.bf16.mxu0 %v3031_v44  ;;  %2601 = vmatprep.subr.bf16.mxu1 %v3034_v48 }
 0x68a   :  { %2571 = vmatpush1.bf16.msra.mxu0 %v3040_v54  ;;  %2603 = vmatpush1.bf16.msra.mxu1 %v3044_v58 }
 0x68b   :  { %2573 = vmatprep.subr.bf16.mxu0 %v3048_v62  ;;  %2605 = vmatprep.subr.bf16.mxu1 %v3051_v4 }
 0x68e   :  { %2575 = vmatpush1.bf16.msra.mxu0 %v3057_v9  ;;  %2607 = vmatpush1.bf16.msra.mxu1 %v3061_v14 }
 0x68f   :  { %2577 = vmatprep.subr.bf16.mxu0 %v3065_v18  ;;  %2609 = vmatprep.subr.bf16.mxu1 %v3068_v22  ;;  %v1859_v18 = vld [vmem:[%s3457_s4] sm:$0xff]  ;;  %v1860_v22 = vld [vmem:[%s3457_s4 + $0x8] sm:$0xff] }
 0x692   :  { %2579 = vmatpush1.bf16.msra.mxu0 %v3074_v25  ;;  %2611 = vmatpush1.bf16.msra.mxu1 %v3078_v27  ;;  %v2613_v25 = vpack.c.bf16 %v1860_v22, %v1859_v18  ;;  %v2888_v27 = vmov 0.0|0.0  }
 0x693   :  { %2612 = vmatprep.subr.bf16.mxu0 %v2888_v27 }
 0x748   :  { %v1581_v47 = vpop.f32.mrb[12].mxu0  ;;  %v1652_v50 = vpop.f32.mrb[12].mxu1 }
 0x749   :  { %v2648_v53 = vadd.f32 %v1581_v47, %v3128_v35  ;;  %v1583_v56 = vpop.f32.mrb[13].mxu0  ;;  %v1654_v60 = vpop.f32.mrb[13].mxu1  ;;  %v2664_v16 = vadd.f32 %v1652_v50, %v3137_v1 }
 0x74a   :  { %v2649_v63 = vadd.f32 %v1583_v56, %v3130_v37  ;;  %v2665_v10 = vadd.f32 %v1654_v60, %v3134_v57 }
 0x74b   :  { %v1977_v3 = vmul.f32 -1.442695, %v2648_v53 }
 0x74c   :  { %v1978_v6 = vmul.f32 -1.442695, %v2649_v63  ;;  %v1979_v13 = vmul.f32 -1.442695, %v2665_v10 }
 0x74d   :  { %2803 = vpow2.f32 %v1977_v3 }
 0x74e   :  { %2805 = vpow2.f32 %v1978_v6 }
 0x74f   :  { %2807 = vpow2.f32 %v1979_v13 }
 0x750   :  { %2809 = vtanh.f32 %v2664_v16 }
 0x757   :  { %v2804_v19 = vpop.eup %2803 }
 0x758   :  { %v2806_v23 = vpop.eup %2805  ;;  %v1664_v26 = vadd.f32 1.0, %v2804_v19 }
 0x759   :  { %v1670_v29 = vadd.f32 1.0, %v2806_v23  ;;  %v2808_v32 = vpop.eup %2807 }
 0x75a   :  { %2811 = vrcp.f32 %v1664_v26  ;;  %v2810_v36 = vpop.eup %2809  ;;  %v1677_v54 = vadd.f32 1.0, %v2808_v32  ;;  %v1983_v26 = vld [vmem:[%s3458_s5] ss:$0 sm:$0xff] }
 0x75b   :  { %2813 = vrcp.f32 %v1670_v29 }
 0x75c   :  { %2815 = vrcp.f32 %v1677_v54 }
 0x764   :  { %v2812_v40 = vpop.eup %2811 }
 0x765   :  { %v2814_v44 = vpop.eup %2813  ;;  %v1681_v48 = vmul.f32 %v2812_v40, %v2810_v36 }
 0x766   :  { %v1680_v58 = vmul.f32 %v2814_v44, %v3350_v15  ;;  %v2816_v4 = vpop.eup %2815 }
 0x768   :  { %v3390_v62 = vadd.f32 %v1681_v48, %v1680_v58 }
 0x76a   :  { %2817 = vtanh.f32 %v3390_v62 }
 0x774   :  { %v2818_v9 = vpop.eup %2817 }
 0x775   :  { %v1684_v14 = vmul.f32 %v2818_v9, %v2816_v4 }
 0x777   :  { %1754 = vmatmul.mubr.f32.vlgmr.msra.gmra.mrb[14].mxu0 %v1684_v14  ;;  %1825 = vmatmul.mubr.f32.vlgmr.msra.gmra.mrb[14].mxu1 %v1684_v14 }
 0x778   :  { %2614 = vmatpush3.bf16.msra.mxu0 %v2613_v25  ;;  %2033 = vmatprep.mubr.msk.f32.mxu0 %vm2889_vm0, %v2887_v0 }
 0x779   :  { %2615 = vmatprep.subr.bf16.mxu0 %v2888_v27 }
 0x77c   :  { %2617 = vmatpush3.bf16.msra.mxu0 %v2616_v39 }
 0x77d   :  { %2618 = vmatprep.subr.bf16.mxu0 %v2888_v27 }
 0x780   :  { %2620 = vmatpush3.bf16.msra.mxu0 %v2619_v30 }
 0x781   :  { %2621 = vmatprep.subr.bf16.mxu0 %v2888_v27 }
 0x784   :  { %2623 = vmatpush3.bf16.msra.mxu0 %v2622_v43 }
 0x785   :  { %2624 = vmatprep.subr.bf16.mxu0 %v2888_v27 }
 0x788   :  { %2626 = vmatpush3.bf16.msra.mxu0 %v2625_v49 }
 0x789   :  { %2627 = vmatprep.subr.bf16.mxu0 %v2888_v27 }
 0x78c   :  { %2629 = vmatpush3.bf16.msra.mxu0 %v2628_v55 }
 0x78d   :  { %2630 = vmatprep.subr.bf16.mxu0 %v2888_v27 }
 0x790   :  { %2632 = vmatpush3.bf16.msra.mxu0 %v2631_v59 }
 0x791   :  { %2633 = vmatprep.subr.bf16.mxu0 %v2888_v27 }
 0x794   :  { %2635 = vmatpush3.bf16.msra.mxu0 %v2634_v5 }
 0x84a   :  { %v1755_v7 = vpop.f32.mrb[14].mxu0  ;;  %v1826_v8 = vpop.f32.mrb[14].mxu1 }
 0x84b   :  { %v2650_v11 = vadd.f32 %v1755_v7, %v3128_v35  ;;  %v1757_v0 = vpop.f32.mrb[15].mxu0  ;;  %v1828_v12 = vpop.f32.mrb[15].mxu1  ;;  %v2666_v50 = vadd.f32 %v1826_v8, %v3137_v1 }
 0x84c   :  { %v2651_v15 = vadd.f32 %v1757_v0, %v3130_v37  ;;  %v2667_v33 = vadd.f32 %v1828_v12, %v3134_v57 }
 0x84d   :  { %v1980_v17 = vmul.f32 -1.442695, %v2650_v11 }
 0x84e   :  { %v1981_v20 = vmul.f32 -1.442695, %v2651_v15  ;;  %v1982_v47 = vmul.f32 -1.442695, %v2667_v33 }
 0x84f   :  { %2819 = vpow2.f32 %v1980_v17 }
 0x850   :  { %2821 = vpow2.f32 %v1981_v20 }
 0x851   :  { %2823 = vpow2.f32 %v1982_v47 }
 0x852   :  { %2825 = vtanh.f32 %v2666_v50 }
 0x859   :  { %v2820_v53 = vpop.eup %2819 }
 0x85a   :  { %v2822_v56 = vpop.eup %2821  ;;  %v1838_v60 = vadd.f32 1.0, %v2820_v53 }
 0x85b   :  { %v1844_v63 = vadd.f32 1.0, %v2822_v56  ;;  %v2824_v35 = vpop.eup %2823 }
 0x85c   :  { %2827 = vrcp.f32 %v1838_v60  ;;  %v2826_v3 = vpop.eup %2825  ;;  %v1851_v13 = vadd.f32 1.0, %v2824_v35 }
 0x85d   :  { %2829 = vrcp.f32 %v1844_v63 }
 0x85e   :  { %2831 = vrcp.f32 %v1851_v13 }
 0x866   :  { %v2828_v37 = vpop.eup %2827 }
 0x867   :  { %v2830_v6 = vpop.eup %2829  ;;  %v1855_v10 = vmul.f32 %v2828_v37, %v2826_v3 }
 0x868   :  { %v1854_v16 = vmul.f32 %v2830_v6, %v3390_v62  ;;  %v2832_v1 = vpop.eup %2831 }
 0x86a   :  { %v1856_v57 = vadd.f32 %v1855_v10, %v1854_v16 }
 0x86c   :  { %2833 = vtanh.f32 %v1856_v57 }
 0x876   :  { %v2834_v19 = vpop.eup %2833 }
 0x877   :  { %v1858_v23 = vmul.f32 %v2834_v19, %v2832_v1 }
 0x879   :  { %2034 = vmatmul.mubr.f32.vlgmr.msra.gmra.mrb[16].mxu0 %v1858_v23 }
 0x94c   :  { %v1948_v29 = vpop.f32.mrb[16].mxu0 }
 0x94d   :  { %v1949_v32 = vadd.f32 %v1983_v26, %v1948_v29  ;;  %v2035_v36 = vpop.f32.mrb[17].mxu0 }
 0x94f   :  { %1952 = vst [vmem:[%s3459_s6] sm:$0xff] %v1949_v32 }
 0x950   :  { %1957 = vsyncpa [#allocation4], 1 }
 0x951   :  { %1958 = vsyncpa [#allocation6], 1 }

</bundles_post_ra>
